<compile_context>
chip_gen: v7x
topology: tpu7x:2x2x1
jax: 0.10.0
libtpu: 0.0.40
codegen_flags: <defaults>
</compile_context>

<pallas_src>
import numpy as np
import jax
import jax.numpy as jnp
from jax import lax
from jax.experimental import pallas as pl
from jax.experimental.pallas import tpu as pltpu


def _round_up(a, b):
    return ((a + b - 1) // b) * b


# ---------------------------------------------------------------------------
# Small-channel path: NCHW in-kernel, W on the lane axis.
# ---------------------------------------------------------------------------
def _dsconv_small_channels(x_nchw, wdw, scale1, shift1, wpw, scale2, shift2, *,
                           K, Ho, Wo, io_dtype):
    """Small Cin/Cout layers.

    With Cin=4 / Cout=8, an NHWC layout would use 4-8 of 128 lanes and emit
    lane-masked stores; putting W on lanes makes every VPU op and the output
    store lane-dense and drops the wrapper transposes. Per-channel weights and
    fused BN scale/shift live in SMEM and are consumed as scalars.
    """
    N, Cin, H, W = x_nchw.shape
    Cout = wpw.shape[1]

    # Row strip: whole output height for small images, else a multiple-of-8
    # strip; Ho is zero-padded up to a full strip (avoids the TH=1 cliff for
    # odd/prime Ho and keeps the out-block (8,128)-legal). Small TH also keeps
    # the Cout live accumulators within the 64-vreg budget.
    TH = Ho if Ho <= 32 else 8
    Ho_pad = _round_up(Ho, TH)
    R = Ho_pad // TH
    THK = TH + K - 1
    H_pad = Ho_pad + K - 1

    x_in = x_nchw
    if H_pad != H:
        x_in = jnp.pad(x_in, ((0, 0), (0, 0), (0, H_pad - H), (0, 0)))
    x_in = x_in.astype(io_dtype)

    wdw_s = wdw.reshape(K * K, Cin).astype(jnp.float32)

    def kernel(x_ref, wdw_ref, s1_ref, b1_ref, wpw_ref, s2_ref, b2_ref, o_ref):
        r = pl.program_id(1)
        row0 = r * TH
        # One (TH, Wo) accumulator per output channel (Cout is small here).
        y2 = [jnp.zeros((TH, Wo), jnp.float32) for _ in range(Cout)]
        for c in range(Cin):
            xc = x_ref[0, c, pl.ds(row0, THK), :].astype(jnp.float32)  # (THK, W)
            acc = jnp.zeros((TH, Wo), jnp.float32)
            for kw in range(K):                   # lane-axis shift hoisted
                xw = xc[:, kw:kw + Wo]            # (THK, Wo)
                for kh in range(K):               # cheap sublane offsets
                    acc = acc + xw[kh:kh + TH, :] * wdw_ref[kh * K + kw, c]
            # fused BN1 + ReLU for channel c (SMEM scalars)
            yc = jnp.maximum(acc * s1_ref[0, c] + b1_ref[0, c], 0.0)
            # pointwise 1x1: scatter channel c's contribution into every map
            for o in range(Cout):
                y2[o] = y2[o] + yc * wpw_ref[c, o]
        for o in range(Cout):
            v = jnp.maximum(y2[o] * s2_ref[0, o] + b2_ref[0, o], 0.0)
            o_ref[0, o] = v.astype(o_ref.dtype)

    smem = pl.BlockSpec(memory_space=pltpu.MemorySpace.SMEM)
    out = pl.pallas_call(
        kernel,
        out_shape=jax.ShapeDtypeStruct((N, Cout, Ho_pad, Wo), io_dtype),
        grid=(N, R),
        in_specs=[
            # whole image per batch: small-channel images are tiny in bytes.
            pl.BlockSpec((1, Cin, H_pad, W), lambda n, r: (n, 0, 0, 0)),
            smem, smem, smem, smem, smem, smem,
        ],
        out_specs=pl.BlockSpec((1, Cout, TH, Wo), lambda n, r: (n, 0, r, 0)),
        compiler_params=pltpu.CompilerParams(
            dimension_semantics=("parallel", "parallel")),
    )(x_in, wdw_s,
      scale1.reshape(1, Cin), shift1.reshape(1, Cin),
      wpw.astype(jnp.float32),
      scale2.reshape(1, Cout), shift2.reshape(1, Cout))
    if Ho_pad != Ho:
        out = out[:, :, :Ho, :]
    return out


# ---------------------------------------------------------------------------
# General path: NHWC in-kernel, manual strip DMA, y-cache, MXU pointwise.
# ---------------------------------------------------------------------------
def _dsconv_general(x_nchw, wdw, scale1, shift1, wpw, scale2, shift2, *,
                    K, Ho, Wo, io_dtype, row_tile, mxu_min_cin, vmem_limit_mb):
    N, Cin, H, W = x_nchw.shape
    Cout = wpw.shape[1]

    # Row strips: Ho zero-padded up to a full strip (no TH=1 cliff for ragged Ho).
    # row_tile: sweep per chip (8-16 on v7x with 64 MiB VMEM, 16-32 on v5e/v6e).
    TH = max(1, min(row_tile, Ho))
    Ho_pad = _round_up(Ho, TH)
    R = Ho_pad // TH
    THK = TH + K - 1
    H_pad = Ho_pad + K - 1

    # Lane-dense Cout tiles: pad to a multiple of 128 when Cout > 128.
    if Cout >= 128:
        TCO = 128
        Cout_p = _round_up(Cout, 128)
    else:
        TCO = Cout_p = Cout
    CO = Cout_p // TCO

    # Sublane-aligned M dim for the pointwise matmul -> the (TH, Wo_pad) merge
    # feeding the MXU is a free relabeling (no relayout copy).
    Wo_pad = _round_up(Wo, 8)
    # MXU vs VPU: mxu_min_cin should be swept per generation (>=32 on v5e's
    # 128-wide MXU, >=64 on v6e/v7x's 256-wide array per the perf review).
    use_mxu = (Cin >= mxu_min_cin) and (TH * Wo_pad >= 128)

    # NCHW -> NHWC (channels on lanes); zero-pad rows so every strip is full.
    x_nhwc = jnp.transpose(x_nchw, (0, 2, 3, 1))
    if H_pad != H:
        x_nhwc = jnp.pad(x_nhwc, ((0, 0), (0, H_pad - H), (0, 0), (0, 0)))
    x_nhwc = x_nhwc.astype(io_dtype)

    wdw_io = wdw.astype(io_dtype)
    if Cout_p != Cout:
        wpw_p = jnp.pad(wpw, ((0, 0), (0, Cout_p - Cout)))
        scale2_p = jnp.pad(scale2, (0, Cout_p - Cout))
        shift2_p = jnp.pad(shift2, (0, Cout_p - Cout))
    else:
        wpw_p, scale2_p, shift2_p = wpw, scale2, shift2
    wpw_io = wpw_p.astype(io_dtype)

    def kernel(x_hbm, wdw_ref, s1_ref, b1_ref, wpw_ref, s2_ref, b2_ref,
               o_ref, xbuf, ycache, sem):
        n = pl.program_id(0)
        r = pl.program_id(1)
        co = pl.program_id(2)
        slot = r % 2

        def strip_copy(strip, buf_slot):
            return pltpu.make_async_copy(
                x_hbm.at[n, pl.ds(strip * TH, THK)],   # (THK, W, Cin) halo'd slab
                xbuf.at[buf_slot],
                sem.at[buf_slot])

        # Depthwise + BN1 + ReLU once per (image, strip); cached in VMEM and
        # reused by every Cout tile (co is sequential / "arbitrary").
        @pl.when(co == 0)
        def _():
            # First strip of this image: its DMA hasn't been prefetched yet.
            @pl.when(r == 0)
            def _():
                strip_copy(0, 0).start()
            strip_copy(r, slot).wait()
            # Double buffering: prefetch the next strip of the same image while
            # this one is consumed (chain is per-image, so the batch axis can
            # still be sharded across TensorCores).
            @pl.when(r + 1 < R)
            def _():
                strip_copy(r + 1, 1 - slot).start()

            xs = xbuf[slot].astype(jnp.float32)            # (THK, W, Cin)
            wdw_k = wdw_ref[...].astype(jnp.float32)       # (K, K, Cin)
            acc = jnp.zeros((TH, Wo, Cin), jnp.float32)
            # TODO(synk): per-tap pltpu.roll through the XLU could replace the
            # kw sublane slices below if the load slot turns out to be binding.
            for kw in range(K):
                xw = xs[:, kw:kw + Wo, :]                  # (THK, Wo, Cin)
                for kh in range(K):                        # cheap major-axis offsets
                    acc = acc + xw[kh:kh + TH, :, :] * wdw_k[kh, kw].reshape(1, 1, Cin)
            s1 = s1_ref[...].reshape(1, 1, Cin)
            b1 = b1_ref[...].reshape(1, 1, Cin)
            ycache[:, :Wo, :] = jnp.maximum(acc * s1 + b1, 0.0)
            if Wo_pad != Wo:
                ycache[:, Wo:Wo_pad, :] = jnp.zeros(
                    (TH, Wo_pad - Wo, Cin), jnp.float32)

        # ---- pointwise 1x1 conv for this Cout tile ----
        y = ycache[...]                                    # (TH, Wo_pad, Cin) f32
        wpw_t = wpw_ref[...]                               # (Cin, TCO), io dtype
        if use_mxu:
            # Wo_pad % 8 == 0 -> reshape is layout-free; bf16 operands hit the
            # bf16 MXU, f32 accumulate via preferred_element_type.
            y2 = jnp.dot(y.reshape(TH * Wo_pad, Cin).astype(wpw_t.dtype), wpw_t,
                         preferred_element_type=jnp.float32)
            y2 = y2.reshape(TH, Wo_pad, TCO)
        else:
            # Narrow contraction: VPU multiply-accumulate instead of a nearly
            # empty MXU pass.
            wpw_f = wpw_t.astype(jnp.float32)
            y2 = jnp.zeros((TH, Wo_pad, TCO), jnp.float32)
            for c in range(Cin):
                y2 = y2 + y[:, :, c:c + 1] * wpw_f[c].reshape(1, 1, TCO)

        s2 = s2_ref[...].reshape(1, 1, TCO)
        b2 = b2_ref[...].reshape(1, 1, TCO)
        out = jnp.maximum(y2[:, :Wo, :] * s2 + b2, 0.0)
        o_ref[0] = out.astype(o_ref.dtype)

    out = pl.pallas_call(
        kernel,
        out_shape=jax.ShapeDtypeStruct((N, Ho_pad, Wo, Cout_p), io_dtype),
        grid=(N, R, CO),
        in_specs=[
            # raw HBM ref; halo'd row strips are DMA'd manually above.
            pl.BlockSpec(memory_space=pl.ANY),
            # small parameters: constant index maps keep them VMEM-resident.
            pl.BlockSpec((K, K, Cin), lambda n, r, co: (0, 0, 0)),
            pl.BlockSpec((1, Cin), lambda n, r, co: (0, 0)),
            pl.BlockSpec((1, Cin), lambda n, r, co: (0, 0)),
            pl.BlockSpec((Cin, TCO), lambda n, r, co: (0, co)),
            pl.BlockSpec((1, TCO), lambda n, r, co: (0, co)),
            pl.BlockSpec((1, TCO), lambda n, r, co: (0, co)),
        ],
        out_specs=pl.BlockSpec((1, TH, Wo, TCO), lambda n, r, co: (n, r, 0, co)),
        scratch_shapes=[
            pltpu.VMEM((2, THK, W, Cin), io_dtype),        # double-buffered strip
            pltpu.VMEM((TH, Wo_pad, Cin), jnp.float32),    # depthwise+BN1+ReLU cache
            pltpu.SemaphoreType.DMA((2,)),
        ],
        compiler_params=pltpu.CompilerParams(
            # batch can shard across TensorCores; r stays sequential (the strip
            # DMA chain prefetches r+1), co stays sequential (y-cache reuse).
            dimension_semantics=("parallel", "arbitrary", "arbitrary"),
            # 48 MB fits v7x's 64 MiB VMEM; sweep higher (96-110 MB) on
            # v5e/v6e's 128 MiB for larger row_tile / TCO tiles.
            vmem_limit_bytes=vmem_limit_mb * 1024 * 1024),
    )(x_nhwc, wdw_io,
      scale1.reshape(1, Cin), shift1.reshape(1, Cin),
      wpw_io, scale2_p.reshape(1, Cout_p), shift2_p.reshape(1, Cout_p))

    out = out[:, :Ho, :, :Cout]
    return jnp.transpose(out, (0, 3, 1, 2))


# ---------------------------------------------------------------------------
# Public wrapper (PyTorch NCHW interface, eval-mode BatchNorm folded).
# ---------------------------------------------------------------------------
def depth_separable_conv2d(x_nchw, params, *, row_tile=8, mxu_min_cin=32,
                           use_bf16=False, vmem_limit_mb=48):
    """x_nchw: (N, Cin, H, W) -> (N, Cout, Ho, Wo)."""
    (wdw, bdw, g1, be1, m1, v1, wpw, bpw, g2, be2, m2, v2, eps) = params
    N, Cin, H, W = x_nchw.shape
    K = wdw.shape[0]
    Cout = wpw.shape[1]
    Ho, Wo = H - K + 1, W - K + 1
    assert Ho >= 1 and Wo >= 1

    # Fold inference-mode BatchNorm + conv biases into per-channel scale/shift.
    scale1 = (g1 / jnp.sqrt(v1 + eps)).astype(jnp.float32)
    shift1 = (be1 + (bdw - m1) * scale1).astype(jnp.float32)
    scale2 = (g2 / jnp.sqrt(v2 + eps)).astype(jnp.float32)
    shift2 = (be2 + (bpw - m2) * scale2).astype(jnp.float32)

    # bf16 I/O halves HBM traffic / VMEM footprint on v5e/v6e/v7x (depthwise
    # still accumulates in f32; MXU takes bf16 operands with f32 accumulation).
    io_dtype = jnp.bfloat16 if use_bf16 else jnp.float32

    if Cin <= 8 and Cout <= 32:
        return _dsconv_small_channels(
            x_nchw, wdw, scale1, shift1, wpw, scale2, shift2,
            K=K, Ho=Ho, Wo=Wo, io_dtype=io_dtype)
    return _dsconv_general(
        x_nchw, wdw, scale1, shift1, wpw, scale2, shift2,
        K=K, Ho=Ho, Wo=Wo, io_dtype=io_dtype, row_tile=row_tile,
        mxu_min_cin=mxu_min_cin, vmem_limit_mb=vmem_limit_mb)


# ---------------------------------------------------------------------------
# Plain-JAX reference matching PyTorch semantics (BN in eval mode).
# ---------------------------------------------------------------------------
def reference(x_nchw, params):
    (wdw, bdw, g1, be1, m1, v1, wpw, bpw, g2, be2, m2, v2, eps) = params
    Cin = x_nchw.shape[1]
    w_oihw = jnp.transpose(wdw, (2, 0, 1))[:, None, :, :]        # (Cin,1,K,K)
    z = lax.conv_general_dilated(
        x_nchw, w_oihw, window_strides=(1, 1), padding="VALID",
        dimension_numbers=("NCHW", "OIHW", "NCHW"),
        feature_group_count=Cin)
    z = z + bdw[None, :, None, None]
    z = (z - m1[None, :, None, None]) / jnp.sqrt(v1[None, :, None, None] + eps)
    z = z * g1[None, :, None, None] + be1[None, :, None, None]
    z = jnp.maximum(z, 0.0)
    p = jnp.einsum("nchw,co->nohw", z, wpw) + bpw[None, :, None, None]
    p = (p - m2[None, :, None, None]) / jnp.sqrt(v2[None, :, None, None] + eps)
    p = p * g2[None, :, None, None] + be2[None, :, None, None]
    return jnp.maximum(p, 0.0)


if __name__ == "__main__":
    def make_params(key, Cin, Cout, K, eps=1e-5):
        ks = jax.random.split(key, 12)
        wdw = 0.2 * jax.random.normal(ks[0], (K, K, Cin), jnp.float32)
        bdw = 0.1 * jax.random.normal(ks[1], (Cin,), jnp.float32)
        g1 = 1.0 + 0.1 * jax.random.normal(ks[2], (Cin,), jnp.float32)
        be1 = 0.1 * jax.random.normal(ks[3], (Cin,), jnp.float32)
        m1 = 0.05 * jax.random.normal(ks[4], (Cin,), jnp.float32)
        v1 = 0.5 + jnp.abs(jax.random.normal(ks[5], (Cin,), jnp.float32))
        wpw = 0.2 * jax.random.normal(ks[6], (Cin, Cout), jnp.float32)
        bpw = 0.1 * jax.random.normal(ks[7], (Cout,), jnp.float32)
        g2 = 1.0 + 0.1 * jax.random.normal(ks[8], (Cout,), jnp.float32)
        be2 = 0.1 * jax.random.normal(ks[9], (Cout,), jnp.float32)
        m2 = 0.05 * jax.random.normal(ks[10], (Cout,), jnp.float32)
        v2 = 0.5 + jnp.abs(jax.random.normal(ks[11], (Cout,), jnp.float32))
        return (wdw, bdw, g1, be1, m1, v1, wpw, bpw, g2, be2, m2, v2,
                jnp.float32(eps))

    key = jax.random.PRNGKey(0)
    kx1, kp1, kx2, kp2 = jax.random.split(key, 4)

    # --- small-channel layer (NCHW / lane-on-W path), module's nominal shape --
    N, Cin, H, W, Cout, K = 2, 4, 16, 16, 8, 3
    x = jax.random.normal(kx1, (N, Cin, H, W), jnp.float32)
    params = make_params(kp1, Cin, Cout, K)
    out = jax.block_until_ready(depth_separable_conv2d(x, params))
    ref = jax.block_until_ready(reference(x, params))
    assert out.shape == (N, Cout, H - K + 1, W - K + 1), out.shape
    np.testing.assert_allclose(np.asarray(out), np.asarray(ref),
                               rtol=1e-4, atol=1e-4)

    # --- wider layer (NHWC strip-DMA + y-cache + MXU path), ragged Ho/Wo -----
    N2, Cin2, H2, W2, Cout2 = 2, 32, 19, 19, 192
    x2 = jax.random.normal(kx2, (N2, Cin2, H2, W2), jnp.float32)
    params2 = make_params(kp2, Cin2, Cout2, K)
    out2 = jax.block_until_ready(depth_separable_conv2d(x2, params2))
    ref2 = jax.block_until_ready(reference(x2, params2))
    assert out2.shape == (N2, Cout2, H2 - K + 1, W2 - K + 1), out2.shape
    # MXU f32 precision on TPU may be below exact f32 -> modest tolerance.
    np.testing.assert_allclose(np.asarray(out2), np.asarray(ref2),
                               rtol=2e-2, atol=2e-2)

    # --- same layer with bf16 I/O (f32 accumulation), loose tolerance --------
    out2b = jax.block_until_ready(
        depth_separable_conv2d(x2, params2, use_bf16=True))
    out2b_f32 = np.asarray(jnp.asarray(out2b, jnp.float32))
    np.testing.assert_allclose(out2b_f32, np.asarray(ref2), rtol=1e-1, atol=1e-1)

    print("KERNEL_OK")
</pallas_src>

<mosaic_0001>
module attributes {stable_mosaic.version = 11 : i64} {
  func.func @kernel(%arg0: i32, %arg1: i32, %arg2: memref<1x4x16x16xf32, #tpu.memory_space<vmem>>, %arg3: memref<9x4xf32, #tpu.memory_space<smem>>, %arg4: memref<1x4xf32, #tpu.memory_space<smem>>, %arg5: memref<1x4xf32, #tpu.memory_space<smem>>, %arg6: memref<4x8xf32, #tpu.memory_space<smem>>, %arg7: memref<1x8xf32, #tpu.memory_space<smem>>, %arg8: memref<1x8xf32, #tpu.memory_space<smem>>, %arg9: memref<1x8x14x14xf32, #tpu.memory_space<vmem>>) attributes {dimension_semantics = [#tpu.dimension_semantics<parallel>, #tpu.dimension_semantics<parallel>], iteration_bounds = array<i64: 2, 1>, scalar_prefetch = 0 : i64, scratch_operands = 0 : i64, tpu.core_type = #tpu.core_type<tc>, window_params = [{transform_indices = @transform_0, window_bounds = array<i64: 1, 4, 16, 16>}, {transform_indices = @transform_1, window_bounds = array<i64: 9, 4>}, {transform_indices = @transform_2, window_bounds = array<i64: 1, 4>}, {transform_indices = @transform_3, window_bounds = array<i64: 1, 4>}, {transform_indices = @transform_4, window_bounds = array<i64: 4, 8>}, {transform_indices = @transform_5, window_bounds = array<i64: 1, 8>}, {transform_indices = @transform_6, window_bounds = array<i64: 1, 8>}, {transform_indices = @transform_7, window_bounds = array<i64: 1, 8, 14, 14>}]} {
    %c14_i32 = arith.constant 14 : i32
    %0 = arith.muli %arg1, %c14_i32 : i32
    %cst = arith.constant 0.000000e+00 : f32
    %1 = vector.broadcast %cst : f32 to vector<14x14xf32>
    %cst_0 = arith.constant 0.000000e+00 : f32
    %2 = vector.broadcast %cst_0 : f32 to vector<14x14xf32>
    %cst_1 = arith.constant 0.000000e+00 : f32
    %3 = vector.broadcast %cst_1 : f32 to vector<14x14xf32>
    %cst_2 = arith.constant 0.000000e+00 : f32
    %4 = vector.broadcast %cst_2 : f32 to vector<14x14xf32>
    %cst_3 = arith.constant 0.000000e+00 : f32
    %5 = vector.broadcast %cst_3 : f32 to vector<14x14xf32>
    %cst_4 = arith.constant 0.000000e+00 : f32
    %6 = vector.broadcast %cst_4 : f32 to vector<14x14xf32>
    %cst_5 = arith.constant 0.000000e+00 : f32
    %7 = vector.broadcast %cst_5 : f32 to vector<14x14xf32>
    %cst_6 = arith.constant 0.000000e+00 : f32
    %8 = vector.broadcast %cst_6 : f32 to vector<14x14xf32>
    %c0 = arith.constant 0 : index
    %c0_7 = arith.constant 0 : index
    %9 = arith.index_cast %0 : i32 to index
    %c0_8 = arith.constant 0 : index
    %10 = vector.load %arg2[%c0, %c0_7, %9, %c0_8] : memref<1x4x16x16xf32, #tpu.memory_space<vmem>>, vector<1x1x16x16xf32>
    %11 = vector.shape_cast %10 : vector<1x1x16x16xf32> to vector<16x16xf32>
    %cst_9 = arith.constant 0.000000e+00 : f32
    %12 = vector.broadcast %cst_9 : f32 to vector<14x14xf32>
    %13 = vector.extract_strided_slice %11 {offsets = [0, 0], sizes = [16, 14], strides = [1, 1]} : vector<16x16xf32> to vector<16x14xf32>
    %14 = vector.extract_strided_slice %13 {offsets = [0, 0], sizes = [14, 14], strides = [1, 1]} : vector<16x14xf32> to vector<14x14xf32>
    %c0_10 = arith.constant 0 : index
    %c0_11 = arith.constant 0 : index
    %15 = memref.load %arg3[%c0_10, %c0_11] : memref<9x4xf32, #tpu.memory_space<smem>>
    %16 = vector.broadcast %15 : f32 to vector<14x14xf32>
    %17 = arith.mulf %14, %16 : vector<14x14xf32>
    %18 = arith.addf %12, %17 : vector<14x14xf32>
    %19 = vector.extract_strided_slice %13 {offsets = [1, 0], sizes = [14, 14], strides = [1, 1]} : vector<16x14xf32> to vector<14x14xf32>
    %c3 = arith.constant 3 : index
    %c0_12 = arith.constant 0 : index
    %20 = memref.load %arg3[%c3, %c0_12] : memref<9x4xf32, #tpu.memory_space<smem>>
    %21 = vector.broadcast %20 : f32 to vector<14x14xf32>
    %22 = arith.mulf %19, %21 : vector<14x14xf32>
    %23 = arith.addf %18, %22 : vector<14x14xf32>
    %24 = vector.extract_strided_slice %13 {offsets = [2, 0], sizes = [14, 14], strides = [1, 1]} : vector<16x14xf32> to vector<14x14xf32>
    %c6 = arith.constant 6 : index
    %c0_13 = arith.constant 0 : index
    %25 = memref.load %arg3[%c6, %c0_13] : memref<9x4xf32, #tpu.memory_space<smem>>
    %26 = vector.broadcast %25 : f32 to vector<14x14xf32>
    %27 = arith.mulf %24, %26 : vector<14x14xf32>
    %28 = arith.addf %23, %27 : vector<14x14xf32>
    %29 = vector.extract_strided_slice %11 {offsets = [0, 1], sizes = [16, 14], strides = [1, 1]} : vector<16x16xf32> to vector<16x14xf32>
    %30 = vector.extract_strided_slice %29 {offsets = [0, 0], sizes = [14, 14], strides = [1, 1]} : vector<16x14xf32> to vector<14x14xf32>
    %c1 = arith.constant 1 : index
    %c0_14 = arith.constant 0 : index
    %31 = memref.load %arg3[%c1, %c0_14] : memref<9x4xf32, #tpu.memory_space<smem>>
    %32 = vector.broadcast %31 : f32 to vector<14x14xf32>
    %33 = arith.mulf %30, %32 : vector<14x14xf32>
    %34 = arith.addf %28, %33 : vector<14x14xf32>
    %35 = vector.extract_strided_slice %29 {offsets = [1, 0], sizes = [14, 14], strides = [1, 1]} : vector<16x14xf32> to vector<14x14xf32>
    %c4 = arith.constant 4 : index
    %c0_15 = arith.constant 0 : index
    %36 = memref.load %arg3[%c4, %c0_15] : memref<9x4xf32, #tpu.memory_space<smem>>
    %37 = vector.broadcast %36 : f32 to vector<14x14xf32>
    %38 = arith.mulf %35, %37 : vector<14x14xf32>
    %39 = arith.addf %34, %38 : vector<14x14xf32>
    %40 = vector.extract_strided_slice %29 {offsets = [2, 0], sizes = [14, 14], strides = [1, 1]} : vector<16x14xf32> to vector<14x14xf32>
    %c7 = arith.constant 7 : index
    %c0_16 = arith.constant 0 : index
    %41 = memref.load %arg3[%c7, %c0_16] : memref<9x4xf32, #tpu.memory_space<smem>>
    %42 = vector.broadcast %41 : f32 to vector<14x14xf32>
    %43 = arith.mulf %40, %42 : vector<14x14xf32>
    %44 = arith.addf %39, %43 : vector<14x14xf32>
    %45 = vector.extract_strided_slice %11 {offsets = [0, 2], sizes = [16, 14], strides = [1, 1]} : vector<16x16xf32> to vector<16x14xf32>
    %46 = vector.extract_strided_slice %45 {offsets = [0, 0], sizes = [14, 14], strides = [1, 1]} : vector<16x14xf32> to vector<14x14xf32>
    %c2 = arith.constant 2 : index
    %c0_17 = arith.constant 0 : index
    %47 = memref.load %arg3[%c2, %c0_17] : memref<9x4xf32, #tpu.memory_space<smem>>
    %48 = vector.broadcast %47 : f32 to vector<14x14xf32>
    %49 = arith.mulf %46, %48 : vector<14x14xf32>
    %50 = arith.addf %44, %49 : vector<14x14xf32>
    %51 = vector.extract_strided_slice %45 {offsets = [1, 0], sizes = [14, 14], strides = [1, 1]} : vector<16x14xf32> to vector<14x14xf32>
    %c5 = arith.constant 5 : index
    %c0_18 = arith.constant 0 : index
    %52 = memref.load %arg3[%c5, %c0_18] : memref<9x4xf32, #tpu.memory_space<smem>>
    %53 = vector.broadcast %52 : f32 to vector<14x14xf32>
    %54 = arith.mulf %51, %53 : vector<14x14xf32>
    %55 = arith.addf %50, %54 : vector<14x14xf32>
    %56 = vector.extract_strided_slice %45 {offsets = [2, 0], sizes = [14, 14], strides = [1, 1]} : vector<16x14xf32> to vector<14x14xf32>
    %c8 = arith.constant 8 : index
    %c0_19 = arith.constant 0 : index
    %57 = memref.load %arg3[%c8, %c0_19] : memref<9x4xf32, #tpu.memory_space<smem>>
    %58 = vector.broadcast %57 : f32 to vector<14x14xf32>
    %59 = arith.mulf %56, %58 : vector<14x14xf32>
    %60 = arith.addf %55, %59 : vector<14x14xf32>
    %c0_20 = arith.constant 0 : index
    %c0_21 = arith.constant 0 : index
    %61 = memref.load %arg4[%c0_20, %c0_21] : memref<1x4xf32, #tpu.memory_space<smem>>
    %62 = vector.broadcast %61 : f32 to vector<14x14xf32>
    %63 = arith.mulf %60, %62 : vector<14x14xf32>
    %c0_22 = arith.constant 0 : index
    %c0_23 = arith.constant 0 : index
    %64 = memref.load %arg5[%c0_22, %c0_23] : memref<1x4xf32, #tpu.memory_space<smem>>
    %65 = vector.broadcast %64 : f32 to vector<14x14xf32>
    %66 = arith.addf %63, %65 : vector<14x14xf32>
    %cst_24 = arith.constant 0.000000e+00 : f32
    %67 = vector.broadcast %cst_24 : f32 to vector<14x14xf32>
    %68 = arith.maximumf %66, %67 : vector<14x14xf32>
    %c0_25 = arith.constant 0 : index
    %c0_26 = arith.constant 0 : index
    %69 = memref.load %arg6[%c0_25, %c0_26] : memref<4x8xf32, #tpu.memory_space<smem>>
    %70 = vector.broadcast %69 : f32 to vector<14x14xf32>
    %71 = arith.mulf %68, %70 : vector<14x14xf32>
    %72 = arith.addf %1, %71 : vector<14x14xf32>
    %c0_27 = arith.constant 0 : index
    %c1_28 = arith.constant 1 : index
    %73 = memref.load %arg6[%c0_27, %c1_28] : memref<4x8xf32, #tpu.memory_space<smem>>
    %74 = vector.broadcast %73 : f32 to vector<14x14xf32>
    %75 = arith.mulf %68, %74 : vector<14x14xf32>
    %76 = arith.addf %2, %75 : vector<14x14xf32>
    %c0_29 = arith.constant 0 : index
    %c2_30 = arith.constant 2 : index
    %77 = memref.load %arg6[%c0_29, %c2_30] : memref<4x8xf32, #tpu.memory_space<smem>>
    %78 = vector.broadcast %77 : f32 to vector<14x14xf32>
    %79 = arith.mulf %68, %78 : vector<14x14xf32>
    %80 = arith.addf %3, %79 : vector<14x14xf32>
    %c0_31 = arith.constant 0 : index
    %c3_32 = arith.constant 3 : index
    %81 = memref.load %arg6[%c0_31, %c3_32] : memref<4x8xf32, #tpu.memory_space<smem>>
    %82 = vector.broadcast %81 : f32 to vector<14x14xf32>
    %83 = arith.mulf %68, %82 : vector<14x14xf32>
    %84 = arith.addf %4, %83 : vector<14x14xf32>
    %c0_33 = arith.constant 0 : index
    %c4_34 = arith.constant 4 : index
    %85 = memref.load %arg6[%c0_33, %c4_34] : memref<4x8xf32, #tpu.memory_space<smem>>
    %86 = vector.broadcast %85 : f32 to vector<14x14xf32>
    %87 = arith.mulf %68, %86 : vector<14x14xf32>
    %88 = arith.addf %5, %87 : vector<14x14xf32>
    %c0_35 = arith.constant 0 : index
    %c5_36 = arith.constant 5 : index
    %89 = memref.load %arg6[%c0_35, %c5_36] : memref<4x8xf32, #tpu.memory_space<smem>>
    %90 = vector.broadcast %89 : f32 to vector<14x14xf32>
    %91 = arith.mulf %68, %90 : vector<14x14xf32>
    %92 = arith.addf %6, %91 : vector<14x14xf32>
    %c0_37 = arith.constant 0 : index
    %c6_38 = arith.constant 6 : index
    %93 = memref.load %arg6[%c0_37, %c6_38] : memref<4x8xf32, #tpu.memory_space<smem>>
    %94 = vector.broadcast %93 : f32 to vector<14x14xf32>
    %95 = arith.mulf %68, %94 : vector<14x14xf32>
    %96 = arith.addf %7, %95 : vector<14x14xf32>
    %c0_39 = arith.constant 0 : index
    %c7_40 = arith.constant 7 : index
    %97 = memref.load %arg6[%c0_39, %c7_40] : memref<4x8xf32, #tpu.memory_space<smem>>
    %98 = vector.broadcast %97 : f32 to vector<14x14xf32>
    %99 = arith.mulf %68, %98 : vector<14x14xf32>
    %100 = arith.addf %8, %99 : vector<14x14xf32>
    %c0_41 = arith.constant 0 : index
    %c1_42 = arith.constant 1 : index
    %101 = arith.index_cast %0 : i32 to index
    %c0_43 = arith.constant 0 : index
    %102 = vector.load %arg2[%c0_41, %c1_42, %101, %c0_43] : memref<1x4x16x16xf32, #tpu.memory_space<vmem>>, vector<1x1x16x16xf32>
    %103 = vector.shape_cast %102 : vector<1x1x16x16xf32> to vector<16x16xf32>
    %cst_44 = arith.constant 0.000000e+00 : f32
    %104 = vector.broadcast %cst_44 : f32 to vector<14x14xf32>
    %105 = vector.extract_strided_slice %103 {offsets = [0, 0], sizes = [16, 14], strides = [1, 1]} : vector<16x16xf32> to vector<16x14xf32>
    %106 = vector.extract_strided_slice %105 {offsets = [0, 0], sizes = [14, 14], strides = [1, 1]} : vector<16x14xf32> to vector<14x14xf32>
    %c0_45 = arith.constant 0 : index
    %c1_46 = arith.constant 1 : index
    %107 = memref.load %arg3[%c0_45, %c1_46] : memref<9x4xf32, #tpu.memory_space<smem>>
    %108 = vector.broadcast %107 : f32 to vector<14x14xf32>
    %109 = arith.mulf %106, %108 : vector<14x14xf32>
    %110 = arith.addf %104, %109 : vector<14x14xf32>
    %111 = vector.extract_strided_slice %105 {offsets = [1, 0], sizes = [14, 14], strides = [1, 1]} : vector<16x14xf32> to vector<14x14xf32>
    %c3_47 = arith.constant 3 : index
    %c1_48 = arith.constant 1 : index
    %112 = memref.load %arg3[%c3_47, %c1_48] : memref<9x4xf32, #tpu.memory_space<smem>>
    %113 = vector.broadcast %112 : f32 to vector<14x14xf32>
    %114 = arith.mulf %111, %113 : vector<14x14xf32>
    %115 = arith.addf %110, %114 : vector<14x14xf32>
    %116 = vector.extract_strided_slice %105 {offsets = [2, 0], sizes = [14, 14], strides = [1, 1]} : vector<16x14xf32> to vector<14x14xf32>
    %c6_49 = arith.constant 6 : index
    %c1_50 = arith.constant 1 : index
    %117 = memref.load %arg3[%c6_49, %c1_50] : memref<9x4xf32, #tpu.memory_space<smem>>
    %118 = vector.broadcast %117 : f32 to vector<14x14xf32>
    %119 = arith.mulf %116, %118 : vector<14x14xf32>
    %120 = arith.addf %115, %119 : vector<14x14xf32>
    %121 = vector.extract_strided_slice %103 {offsets = [0, 1], sizes = [16, 14], strides = [1, 1]} : vector<16x16xf32> to vector<16x14xf32>
    %122 = vector.extract_strided_slice %121 {offsets = [0, 0], sizes = [14, 14], strides = [1, 1]} : vector<16x14xf32> to vector<14x14xf32>
    %c1_51 = arith.constant 1 : index
    %c1_52 = arith.constant 1 : index
    %123 = memref.load %arg3[%c1_51, %c1_52] : memref<9x4xf32, #tpu.memory_space<smem>>
    %124 = vector.broadcast %123 : f32 to vector<14x14xf32>
    %125 = arith.mulf %122, %124 : vector<14x14xf32>
    %126 = arith.addf %120, %125 : vector<14x14xf32>
    %127 = vector.extract_strided_slice %121 {offsets = [1, 0], sizes = [14, 14], strides = [1, 1]} : vector<16x14xf32> to vector<14x14xf32>
    %c4_53 = arith.constant 4 : index
    %c1_54 = arith.constant 1 : index
    %128 = memref.load %arg3[%c4_53, %c1_54] : memref<9x4xf32, #tpu.memory_space<smem>>
    %129 = vector.broadcast %128 : f32 to vector<14x14xf32>
    %130 = arith.mulf %127, %129 : vector<14x14xf32>
    %131 = arith.addf %126, %130 : vector<14x14xf32>
    %132 = vector.extract_strided_slice %121 {offsets = [2, 0], sizes = [14, 14], strides = [1, 1]} : vector<16x14xf32> to vector<14x14xf32>
    %c7_55 = arith.constant 7 : index
    %c1_56 = arith.constant 1 : index
    %133 = memref.load %arg3[%c7_55, %c1_56] : memref<9x4xf32, #tpu.memory_space<smem>>
    %134 = vector.broadcast %133 : f32 to vector<14x14xf32>
    %135 = arith.mulf %132, %134 : vector<14x14xf32>
    %136 = arith.addf %131, %135 : vector<14x14xf32>
    %137 = vector.extract_strided_slice %103 {offsets = [0, 2], sizes = [16, 14], strides = [1, 1]} : vector<16x16xf32> to vector<16x14xf32>
    %138 = vector.extract_strided_slice %137 {offsets = [0, 0], sizes = [14, 14], strides = [1, 1]} : vector<16x14xf32> to vector<14x14xf32>
    %c2_57 = arith.constant 2 : index
    %c1_58 = arith.constant 1 : index
    %139 = memref.load %arg3[%c2_57, %c1_58] : memref<9x4xf32, #tpu.memory_space<smem>>
    %140 = vector.broadcast %139 : f32 to vector<14x14xf32>
    %141 = arith.mulf %138, %140 : vector<14x14xf32>
    %142 = arith.addf %136, %141 : vector<14x14xf32>
    %143 = vector.extract_strided_slice %137 {offsets = [1, 0], sizes = [14, 14], strides = [1, 1]} : vector<16x14xf32> to vector<14x14xf32>
    %c5_59 = arith.constant 5 : index
    %c1_60 = arith.constant 1 : index
    %144 = memref.load %arg3[%c5_59, %c1_60] : memref<9x4xf32, #tpu.memory_space<smem>>
    %145 = vector.broadcast %144 : f32 to vector<14x14xf32>
    %146 = arith.mulf %143, %145 : vector<14x14xf32>
    %147 = arith.addf %142, %146 : vector<14x14xf32>
    %148 = vector.extract_strided_slice %137 {offsets = [2, 0], sizes = [14, 14], strides = [1, 1]} : vector<16x14xf32> to vector<14x14xf32>
    %c8_61 = arith.constant 8 : index
    %c1_62 = arith.constant 1 : index
    %149 = memref.load %arg3[%c8_61, %c1_62] : memref<9x4xf32, #tpu.memory_space<smem>>
    %150 = vector.broadcast %149 : f32 to vector<14x14xf32>
    %151 = arith.mulf %148, %150 : vector<14x14xf32>
    %152 = arith.addf %147, %151 : vector<14x14xf32>
    %c0_63 = arith.constant 0 : index
    %c1_64 = arith.constant 1 : index
    %153 = memref.load %arg4[%c0_63, %c1_64] : memref<1x4xf32, #tpu.memory_space<smem>>
    %154 = vector.broadcast %153 : f32 to vector<14x14xf32>
    %155 = arith.mulf %152, %154 : vector<14x14xf32>
    %c0_65 = arith.constant 0 : index
    %c1_66 = arith.constant 1 : index
    %156 = memref.load %arg5[%c0_65, %c1_66] : memref<1x4xf32, #tpu.memory_space<smem>>
    %157 = vector.broadcast %156 : f32 to vector<14x14xf32>
    %158 = arith.addf %155, %157 : vector<14x14xf32>
    %cst_67 = arith.constant 0.000000e+00 : f32
    %159 = vector.broadcast %cst_67 : f32 to vector<14x14xf32>
    %160 = arith.maximumf %158, %159 : vector<14x14xf32>
    %c1_68 = arith.constant 1 : index
    %c0_69 = arith.constant 0 : index
    %161 = memref.load %arg6[%c1_68, %c0_69] : memref<4x8xf32, #tpu.memory_space<smem>>
    %162 = vector.broadcast %161 : f32 to vector<14x14xf32>
    %163 = arith.mulf %160, %162 : vector<14x14xf32>
    %164 = arith.addf %72, %163 : vector<14x14xf32>
    %c1_70 = arith.constant 1 : index
    %c1_71 = arith.constant 1 : index
    %165 = memref.load %arg6[%c1_70, %c1_71] : memref<4x8xf32, #tpu.memory_space<smem>>
    %166 = vector.broadcast %165 : f32 to vector<14x14xf32>
    %167 = arith.mulf %160, %166 : vector<14x14xf32>
    %168 = arith.addf %76, %167 : vector<14x14xf32>
    %c1_72 = arith.constant 1 : index
    %c2_73 = arith.constant 2 : index
    %169 = memref.load %arg6[%c1_72, %c2_73] : memref<4x8xf32, #tpu.memory_space<smem>>
    %170 = vector.broadcast %169 : f32 to vector<14x14xf32>
    %171 = arith.mulf %160, %170 : vector<14x14xf32>
    %172 = arith.addf %80, %171 : vector<14x14xf32>
    %c1_74 = arith.constant 1 : index
    %c3_75 = arith.constant 3 : index
    %173 = memref.load %arg6[%c1_74, %c3_75] : memref<4x8xf32, #tpu.memory_space<smem>>
    %174 = vector.broadcast %173 : f32 to vector<14x14xf32>
    %175 = arith.mulf %160, %174 : vector<14x14xf32>
    %176 = arith.addf %84, %175 : vector<14x14xf32>
    %c1_76 = arith.constant 1 : index
    %c4_77 = arith.constant 4 : index
    %177 = memref.load %arg6[%c1_76, %c4_77] : memref<4x8xf32, #tpu.memory_space<smem>>
    %178 = vector.broadcast %177 : f32 to vector<14x14xf32>
    %179 = arith.mulf %160, %178 : vector<14x14xf32>
    %180 = arith.addf %88, %179 : vector<14x14xf32>
    %c1_78 = arith.constant 1 : index
    %c5_79 = arith.constant 5 : index
    %181 = memref.load %arg6[%c1_78, %c5_79] : memref<4x8xf32, #tpu.memory_space<smem>>
    %182 = vector.broadcast %181 : f32 to vector<14x14xf32>
    %183 = arith.mulf %160, %182 : vector<14x14xf32>
    %184 = arith.addf %92, %183 : vector<14x14xf32>
    %c1_80 = arith.constant 1 : index
    %c6_81 = arith.constant 6 : index
    %185 = memref.load %arg6[%c1_80, %c6_81] : memref<4x8xf32, #tpu.memory_space<smem>>
    %186 = vector.broadcast %185 : f32 to vector<14x14xf32>
    %187 = arith.mulf %160, %186 : vector<14x14xf32>
    %188 = arith.addf %96, %187 : vector<14x14xf32>
    %c1_82 = arith.constant 1 : index
    %c7_83 = arith.constant 7 : index
    %189 = memref.load %arg6[%c1_82, %c7_83] : memref<4x8xf32, #tpu.memory_space<smem>>
    %190 = vector.broadcast %189 : f32 to vector<14x14xf32>
    %191 = arith.mulf %160, %190 : vector<14x14xf32>
    %192 = arith.addf %100, %191 : vector<14x14xf32>
    %c0_84 = arith.constant 0 : index
    %c2_85 = arith.constant 2 : index
    %193 = arith.index_cast %0 : i32 to index
    %c0_86 = arith.constant 0 : index
    %194 = vector.load %arg2[%c0_84, %c2_85, %193, %c0_86] : memref<1x4x16x16xf32, #tpu.memory_space<vmem>>, vector<1x1x16x16xf32>
    %195 = vector.shape_cast %194 : vector<1x1x16x16xf32> to vector<16x16xf32>
    %cst_87 = arith.constant 0.000000e+00 : f32
    %196 = vector.broadcast %cst_87 : f32 to vector<14x14xf32>
    %197 = vector.extract_strided_slice %195 {offsets = [0, 0], sizes = [16, 14], strides = [1, 1]} : vector<16x16xf32> to vector<16x14xf32>
    %198 = vector.extract_strided_slice %197 {offsets = [0, 0], sizes = [14, 14], strides = [1, 1]} : vector<16x14xf32> to vector<14x14xf32>
    %c0_88 = arith.constant 0 : index
    %c2_89 = arith.constant 2 : index
    %199 = memref.load %arg3[%c0_88, %c2_89] : memref<9x4xf32, #tpu.memory_space<smem>>
    %200 = vector.broadcast %199 : f32 to vector<14x14xf32>
    %201 = arith.mulf %198, %200 : vector<14x14xf32>
    %202 = arith.addf %196, %201 : vector<14x14xf32>
    %203 = vector.extract_strided_slice %197 {offsets = [1, 0], sizes = [14, 14], strides = [1, 1]} : vector<16x14xf32> to vector<14x14xf32>
    %c3_90 = arith.constant 3 : index
    %c2_91 = arith.constant 2 : index
    %204 = memref.load %arg3[%c3_90, %c2_91] : memref<9x4xf32, #tpu.memory_space<smem>>
    %205 = vector.broadcast %204 : f32 to vector<14x14xf32>
    %206 = arith.mulf %203, %205 : vector<14x14xf32>
    %207 = arith.addf %202, %206 : vector<14x14xf32>
    %208 = vector.extract_strided_slice %197 {offsets = [2, 0], sizes = [14, 14], strides = [1, 1]} : vector<16x14xf32> to vector<14x14xf32>
    %c6_92 = arith.constant 6 : index
    %c2_93 = arith.constant 2 : index
    %209 = memref.load %arg3[%c6_92, %c2_93] : memref<9x4xf32, #tpu.memory_space<smem>>
    %210 = vector.broadcast %209 : f32 to vector<14x14xf32>
    %211 = arith.mulf %208, %210 : vector<14x14xf32>
    %212 = arith.addf %207, %211 : vector<14x14xf32>
    %213 = vector.extract_strided_slice %195 {offsets = [0, 1], sizes = [16, 14], strides = [1, 1]} : vector<16x16xf32> to vector<16x14xf32>
    %214 = vector.extract_strided_slice %213 {offsets = [0, 0], sizes = [14, 14], strides = [1, 1]} : vector<16x14xf32> to vector<14x14xf32>
    %c1_94 = arith.constant 1 : index
    %c2_95 = arith.constant 2 : index
    %215 = memref.load %arg3[%c1_94, %c2_95] : memref<9x4xf32, #tpu.memory_space<smem>>
    %216 = vector.broadcast %215 : f32 to vector<14x14xf32>
    %217 = arith.mulf %214, %216 : vector<14x14xf32>
    %218 = arith.addf %212, %217 : vector<14x14xf32>
    %219 = vector.extract_strided_slice %213 {offsets = [1, 0], sizes = [14, 14], strides = [1, 1]} : vector<16x14xf32> to vector<14x14xf32>
    %c4_96 = arith.constant 4 : index
    %c2_97 = arith.constant 2 : index
    %220 = memref.load %arg3[%c4_96, %c2_97] : memref<9x4xf32, #tpu.memory_space<smem>>
    %221 = vector.broadcast %220 : f32 to vector<14x14xf32>
    %222 = arith.mulf %219, %221 : vector<14x14xf32>
    %223 = arith.addf %218, %222 : vector<14x14xf32>
    %224 = vector.extract_strided_slice %213 {offsets = [2, 0], sizes = [14, 14], strides = [1, 1]} : vector<16x14xf32> to vector<14x14xf32>
    %c7_98 = arith.constant 7 : index
    %c2_99 = arith.constant 2 : index
    %225 = memref.load %arg3[%c7_98, %c2_99] : memref<9x4xf32, #tpu.memory_space<smem>>
    %226 = vector.broadcast %225 : f32 to vector<14x14xf32>
    %227 = arith.mulf %224, %226 : vector<14x14xf32>
    %228 = arith.addf %223, %227 : vector<14x14xf32>
    %229 = vector.extract_strided_slice %195 {offsets = [0, 2], sizes = [16, 14], strides = [1, 1]} : vector<16x16xf32> to vector<16x14xf32>
    %230 = vector.extract_strided_slice %229 {offsets = [0, 0], sizes = [14, 14], strides = [1, 1]} : vector<16x14xf32> to vector<14x14xf32>
    %c2_100 = arith.constant 2 : index
    %c2_101 = arith.constant 2 : index
    %231 = memref.load %arg3[%c2_100, %c2_101] : memref<9x4xf32, #tpu.memory_space<smem>>
    %232 = vector.broadcast %231 : f32 to vector<14x14xf32>
    %233 = arith.mulf %230, %232 : vector<14x14xf32>
    %234 = arith.addf %228, %233 : vector<14x14xf32>
    %235 = vector.extract_strided_slice %229 {offsets = [1, 0], sizes = [14, 14], strides = [1, 1]} : vector<16x14xf32> to vector<14x14xf32>
    %c5_102 = arith.constant 5 : index
    %c2_103 = arith.constant 2 : index
    %236 = memref.load %arg3[%c5_102, %c2_103] : memref<9x4xf32, #tpu.memory_space<smem>>
    %237 = vector.broadcast %236 : f32 to vector<14x14xf32>
    %238 = arith.mulf %235, %237 : vector<14x14xf32>
    %239 = arith.addf %234, %238 : vector<14x14xf32>
    %240 = vector.extract_strided_slice %229 {offsets = [2, 0], sizes = [14, 14], strides = [1, 1]} : vector<16x14xf32> to vector<14x14xf32>
    %c8_104 = arith.constant 8 : index
    %c2_105 = arith.constant 2 : index
    %241 = memref.load %arg3[%c8_104, %c2_105] : memref<9x4xf32, #tpu.memory_space<smem>>
    %242 = vector.broadcast %241 : f32 to vector<14x14xf32>
    %243 = arith.mulf %240, %242 : vector<14x14xf32>
    %244 = arith.addf %239, %243 : vector<14x14xf32>
    %c0_106 = arith.constant 0 : index
    %c2_107 = arith.constant 2 : index
    %245 = memref.load %arg4[%c0_106, %c2_107] : memref<1x4xf32, #tpu.memory_space<smem>>
    %246 = vector.broadcast %245 : f32 to vector<14x14xf32>
    %247 = arith.mulf %244, %246 : vector<14x14xf32>
    %c0_108 = arith.constant 0 : index
    %c2_109 = arith.constant 2 : index
    %248 = memref.load %arg5[%c0_108, %c2_109] : memref<1x4xf32, #tpu.memory_space<smem>>
    %249 = vector.broadcast %248 : f32 to vector<14x14xf32>
    %250 = arith.addf %247, %249 : vector<14x14xf32>
    %cst_110 = arith.constant 0.000000e+00 : f32
    %251 = vector.broadcast %cst_110 : f32 to vector<14x14xf32>
    %252 = arith.maximumf %250, %251 : vector<14x14xf32>
    %c2_111 = arith.constant 2 : index
    %c0_112 = arith.constant 0 : index
    %253 = memref.load %arg6[%c2_111, %c0_112] : memref<4x8xf32, #tpu.memory_space<smem>>
    %254 = vector.broadcast %253 : f32 to vector<14x14xf32>
    %255 = arith.mulf %252, %254 : vector<14x14xf32>
    %256 = arith.addf %164, %255 : vector<14x14xf32>
    %c2_113 = arith.constant 2 : index
    %c1_114 = arith.constant 1 : index
    %257 = memref.load %arg6[%c2_113, %c1_114] : memref<4x8xf32, #tpu.memory_space<smem>>
    %258 = vector.broadcast %257 : f32 to vector<14x14xf32>
    %259 = arith.mulf %252, %258 : vector<14x14xf32>
    %260 = arith.addf %168, %259 : vector<14x14xf32>
    %c2_115 = arith.constant 2 : index
    %c2_116 = arith.constant 2 : index
    %261 = memref.load %arg6[%c2_115, %c2_116] : memref<4x8xf32, #tpu.memory_space<smem>>
    %262 = vector.broadcast %261 : f32 to vector<14x14xf32>
    %263 = arith.mulf %252, %262 : vector<14x14xf32>
    %264 = arith.addf %172, %263 : vector<14x14xf32>
    %c2_117 = arith.constant 2 : index
    %c3_118 = arith.constant 3 : index
    %265 = memref.load %arg6[%c2_117, %c3_118] : memref<4x8xf32, #tpu.memory_space<smem>>
    %266 = vector.broadcast %265 : f32 to vector<14x14xf32>
    %267 = arith.mulf %252, %266 : vector<14x14xf32>
    %268 = arith.addf %176, %267 : vector<14x14xf32>
    %c2_119 = arith.constant 2 : index
    %c4_120 = arith.constant 4 : index
    %269 = memref.load %arg6[%c2_119, %c4_120] : memref<4x8xf32, #tpu.memory_space<smem>>
    %270 = vector.broadcast %269 : f32 to vector<14x14xf32>
    %271 = arith.mulf %252, %270 : vector<14x14xf32>
    %272 = arith.addf %180, %271 : vector<14x14xf32>
    %c2_121 = arith.constant 2 : index
    %c5_122 = arith.constant 5 : index
    %273 = memref.load %arg6[%c2_121, %c5_122] : memref<4x8xf32, #tpu.memory_space<smem>>
    %274 = vector.broadcast %273 : f32 to vector<14x14xf32>
    %275 = arith.mulf %252, %274 : vector<14x14xf32>
    %276 = arith.addf %184, %275 : vector<14x14xf32>
    %c2_123 = arith.constant 2 : index
    %c6_124 = arith.constant 6 : index
    %277 = memref.load %arg6[%c2_123, %c6_124] : memref<4x8xf32, #tpu.memory_space<smem>>
    %278 = vector.broadcast %277 : f32 to vector<14x14xf32>
    %279 = arith.mulf %252, %278 : vector<14x14xf32>
    %280 = arith.addf %188, %279 : vector<14x14xf32>
    %c2_125 = arith.constant 2 : index
    %c7_126 = arith.constant 7 : index
    %281 = memref.load %arg6[%c2_125, %c7_126] : memref<4x8xf32, #tpu.memory_space<smem>>
    %282 = vector.broadcast %281 : f32 to vector<14x14xf32>
    %283 = arith.mulf %252, %282 : vector<14x14xf32>
    %284 = arith.addf %192, %283 : vector<14x14xf32>
    %c0_127 = arith.constant 0 : index
    %c3_128 = arith.constant 3 : index
    %285 = arith.index_cast %0 : i32 to index
    %c0_129 = arith.constant 0 : index
    %286 = vector.load %arg2[%c0_127, %c3_128, %285, %c0_129] : memref<1x4x16x16xf32, #tpu.memory_space<vmem>>, vector<1x1x16x16xf32>
    %287 = vector.shape_cast %286 : vector<1x1x16x16xf32> to vector<16x16xf32>
    %cst_130 = arith.constant 0.000000e+00 : f32
    %288 = vector.broadcast %cst_130 : f32 to vector<14x14xf32>
    %289 = vector.extract_strided_slice %287 {offsets = [0, 0], sizes = [16, 14], strides = [1, 1]} : vector<16x16xf32> to vector<16x14xf32>
    %290 = vector.extract_strided_slice %289 {offsets = [0, 0], sizes = [14, 14], strides = [1, 1]} : vector<16x14xf32> to vector<14x14xf32>
    %c0_131 = arith.constant 0 : index
    %c3_132 = arith.constant 3 : index
    %291 = memref.load %arg3[%c0_131, %c3_132] : memref<9x4xf32, #tpu.memory_space<smem>>
    %292 = vector.broadcast %291 : f32 to vector<14x14xf32>
    %293 = arith.mulf %290, %292 : vector<14x14xf32>
    %294 = arith.addf %288, %293 : vector<14x14xf32>
    %295 = vector.extract_strided_slice %289 {offsets = [1, 0], sizes = [14, 14], strides = [1, 1]} : vector<16x14xf32> to vector<14x14xf32>
    %c3_133 = arith.constant 3 : index
    %c3_134 = arith.constant 3 : index
    %296 = memref.load %arg3[%c3_133, %c3_134] : memref<9x4xf32, #tpu.memory_space<smem>>
    %297 = vector.broadcast %296 : f32 to vector<14x14xf32>
    %298 = arith.mulf %295, %297 : vector<14x14xf32>
    %299 = arith.addf %294, %298 : vector<14x14xf32>
    %300 = vector.extract_strided_slice %289 {offsets = [2, 0], sizes = [14, 14], strides = [1, 1]} : vector<16x14xf32> to vector<14x14xf32>
    %c6_135 = arith.constant 6 : index
    %c3_136 = arith.constant 3 : index
    %301 = memref.load %arg3[%c6_135, %c3_136] : memref<9x4xf32, #tpu.memory_space<smem>>
    %302 = vector.broadcast %301 : f32 to vector<14x14xf32>
    %303 = arith.mulf %300, %302 : vector<14x14xf32>
    %304 = arith.addf %299, %303 : vector<14x14xf32>
    %305 = vector.extract_strided_slice %287 {offsets = [0, 1], sizes = [16, 14], strides = [1, 1]} : vector<16x16xf32> to vector<16x14xf32>
    %306 = vector.extract_strided_slice %305 {offsets = [0, 0], sizes = [14, 14], strides = [1, 1]} : vector<16x14xf32> to vector<14x14xf32>
    %c1_137 = arith.constant 1 : index
    %c3_138 = arith.constant 3 : index
    %307 = memref.load %arg3[%c1_137, %c3_138] : memref<9x4xf32, #tpu.memory_space<smem>>
    %308 = vector.broadcast %307 : f32 to vector<14x14xf32>
    %309 = arith.mulf %306, %308 : vector<14x14xf32>
    %310 = arith.addf %304, %309 : vector<14x14xf32>
    %311 = vector.extract_strided_slice %305 {offsets = [1, 0], sizes = [14, 14], strides = [1, 1]} : vector<16x14xf32> to vector<14x14xf32>
    %c4_139 = arith.constant 4 : index
    %c3_140 = arith.constant 3 : index
    %312 = memref.load %arg3[%c4_139, %c3_140] : memref<9x4xf32, #tpu.memory_space<smem>>
    %313 = vector.broadcast %312 : f32 to vector<14x14xf32>
    %314 = arith.mulf %311, %313 : vector<14x14xf32>
    %315 = arith.addf %310, %314 : vector<14x14xf32>
    %316 = vector.extract_strided_slice %305 {offsets = [2, 0], sizes = [14, 14], strides = [1, 1]} : vector<16x14xf32> to vector<14x14xf32>
    %c7_141 = arith.constant 7 : index
    %c3_142 = arith.constant 3 : index
    %317 = memref.load %arg3[%c7_141, %c3_142] : memref<9x4xf32, #tpu.memory_space<smem>>
    %318 = vector.broadcast %317 : f32 to vector<14x14xf32>
    %319 = arith.mulf %316, %318 : vector<14x14xf32>
    %320 = arith.addf %315, %319 : vector<14x14xf32>
    %321 = vector.extract_strided_slice %287 {offsets = [0, 2], sizes = [16, 14], strides = [1, 1]} : vector<16x16xf32> to vector<16x14xf32>
    %322 = vector.extract_strided_slice %321 {offsets = [0, 0], sizes = [14, 14], strides = [1, 1]} : vector<16x14xf32> to vector<14x14xf32>
    %c2_143 = arith.constant 2 : index
    %c3_144 = arith.constant 3 : index
    %323 = memref.load %arg3[%c2_143, %c3_144] : memref<9x4xf32, #tpu.memory_space<smem>>
    %324 = vector.broadcast %323 : f32 to vector<14x14xf32>
    %325 = arith.mulf %322, %324 : vector<14x14xf32>
    %326 = arith.addf %320, %325 : vector<14x14xf32>
    %327 = vector.extract_strided_slice %321 {offsets = [1, 0], sizes = [14, 14], strides = [1, 1]} : vector<16x14xf32> to vector<14x14xf32>
    %c5_145 = arith.constant 5 : index
    %c3_146 = arith.constant 3 : index
    %328 = memref.load %arg3[%c5_145, %c3_146] : memref<9x4xf32, #tpu.memory_space<smem>>
    %329 = vector.broadcast %328 : f32 to vector<14x14xf32>
    %330 = arith.mulf %327, %329 : vector<14x14xf32>
    %331 = arith.addf %326, %330 : vector<14x14xf32>
    %332 = vector.extract_strided_slice %321 {offsets = [2, 0], sizes = [14, 14], strides = [1, 1]} : vector<16x14xf32> to vector<14x14xf32>
    %c8_147 = arith.constant 8 : index
    %c3_148 = arith.constant 3 : index
    %333 = memref.load %arg3[%c8_147, %c3_148] : memref<9x4xf32, #tpu.memory_space<smem>>
    %334 = vector.broadcast %333 : f32 to vector<14x14xf32>
    %335 = arith.mulf %332, %334 : vector<14x14xf32>
    %336 = arith.addf %331, %335 : vector<14x14xf32>
    %c0_149 = arith.constant 0 : index
    %c3_150 = arith.constant 3 : index
    %337 = memref.load %arg4[%c0_149, %c3_150] : memref<1x4xf32, #tpu.memory_space<smem>>
    %338 = vector.broadcast %337 : f32 to vector<14x14xf32>
    %339 = arith.mulf %336, %338 : vector<14x14xf32>
    %c0_151 = arith.constant 0 : index
    %c3_152 = arith.constant 3 : index
    %340 = memref.load %arg5[%c0_151, %c3_152] : memref<1x4xf32, #tpu.memory_space<smem>>
    %341 = vector.broadcast %340 : f32 to vector<14x14xf32>
    %342 = arith.addf %339, %341 : vector<14x14xf32>
    %cst_153 = arith.constant 0.000000e+00 : f32
    %343 = vector.broadcast %cst_153 : f32 to vector<14x14xf32>
    %344 = arith.maximumf %342, %343 : vector<14x14xf32>
    %c3_154 = arith.constant 3 : index
    %c0_155 = arith.constant 0 : index
    %345 = memref.load %arg6[%c3_154, %c0_155] : memref<4x8xf32, #tpu.memory_space<smem>>
    %346 = vector.broadcast %345 : f32 to vector<14x14xf32>
    %347 = arith.mulf %344, %346 : vector<14x14xf32>
    %348 = arith.addf %256, %347 : vector<14x14xf32>
    %c3_156 = arith.constant 3 : index
    %c1_157 = arith.constant 1 : index
    %349 = memref.load %arg6[%c3_156, %c1_157] : memref<4x8xf32, #tpu.memory_space<smem>>
    %350 = vector.broadcast %349 : f32 to vector<14x14xf32>
    %351 = arith.mulf %344, %350 : vector<14x14xf32>
    %352 = arith.addf %260, %351 : vector<14x14xf32>
    %c3_158 = arith.constant 3 : index
    %c2_159 = arith.constant 2 : index
    %353 = memref.load %arg6[%c3_158, %c2_159] : memref<4x8xf32, #tpu.memory_space<smem>>
    %354 = vector.broadcast %353 : f32 to vector<14x14xf32>
    %355 = arith.mulf %344, %354 : vector<14x14xf32>
    %356 = arith.addf %264, %355 : vector<14x14xf32>
    %c3_160 = arith.constant 3 : index
    %c3_161 = arith.constant 3 : index
    %357 = memref.load %arg6[%c3_160, %c3_161] : memref<4x8xf32, #tpu.memory_space<smem>>
    %358 = vector.broadcast %357 : f32 to vector<14x14xf32>
    %359 = arith.mulf %344, %358 : vector<14x14xf32>
    %360 = arith.addf %268, %359 : vector<14x14xf32>
    %c3_162 = arith.constant 3 : index
    %c4_163 = arith.constant 4 : index
    %361 = memref.load %arg6[%c3_162, %c4_163] : memref<4x8xf32, #tpu.memory_space<smem>>
    %362 = vector.broadcast %361 : f32 to vector<14x14xf32>
    %363 = arith.mulf %344, %362 : vector<14x14xf32>
    %364 = arith.addf %272, %363 : vector<14x14xf32>
    %c3_164 = arith.constant 3 : index
    %c5_165 = arith.constant 5 : index
    %365 = memref.load %arg6[%c3_164, %c5_165] : memref<4x8xf32, #tpu.memory_space<smem>>
    %366 = vector.broadcast %365 : f32 to vector<14x14xf32>
    %367 = arith.mulf %344, %366 : vector<14x14xf32>
    %368 = arith.addf %276, %367 : vector<14x14xf32>
    %c3_166 = arith.constant 3 : index
    %c6_167 = arith.constant 6 : index
    %369 = memref.load %arg6[%c3_166, %c6_167] : memref<4x8xf32, #tpu.memory_space<smem>>
    %370 = vector.broadcast %369 : f32 to vector<14x14xf32>
    %371 = arith.mulf %344, %370 : vector<14x14xf32>
    %372 = arith.addf %280, %371 : vector<14x14xf32>
    %c3_168 = arith.constant 3 : index
    %c7_169 = arith.constant 7 : index
    %373 = memref.load %arg6[%c3_168, %c7_169] : memref<4x8xf32, #tpu.memory_space<smem>>
    %374 = vector.broadcast %373 : f32 to vector<14x14xf32>
    %375 = arith.mulf %344, %374 : vector<14x14xf32>
    %376 = arith.addf %284, %375 : vector<14x14xf32>
    %c0_170 = arith.constant 0 : index
    %c0_171 = arith.constant 0 : index
    %377 = memref.load %arg7[%c0_170, %c0_171] : memref<1x8xf32, #tpu.memory_space<smem>>
    %378 = vector.broadcast %377 : f32 to vector<14x14xf32>
    %379 = arith.mulf %348, %378 : vector<14x14xf32>
    %c0_172 = arith.constant 0 : index
    %c0_173 = arith.constant 0 : index
    %380 = memref.load %arg8[%c0_172, %c0_173] : memref<1x8xf32, #tpu.memory_space<smem>>
    %381 = vector.broadcast %380 : f32 to vector<14x14xf32>
    %382 = arith.addf %379, %381 : vector<14x14xf32>
    %cst_174 = arith.constant 0.000000e+00 : f32
    %383 = vector.broadcast %cst_174 : f32 to vector<14x14xf32>
    %384 = arith.maximumf %382, %383 : vector<14x14xf32>
    %c0_175 = arith.constant 0 : index
    %c0_176 = arith.constant 0 : index
    %c0_177 = arith.constant 0 : index
    %c0_178 = arith.constant 0 : index
    %385 = vector.load %arg9[%c0_175, %c0_176, %c0_177, %c0_178] : memref<1x8x14x14xf32, #tpu.memory_space<vmem>>, vector<1x1x14x14xf32>
    %386 = vector.shape_cast %385 : vector<1x1x14x14xf32> to vector<14x14xf32>
    %387 = vector.shape_cast %384 : vector<14x14xf32> to vector<1x1x14x14xf32>
    tpu.vector_store %arg9[%c0_175, %c0_176, %c0_177, %c0_178], %387 {strides = array<i32>} : memref<1x8x14x14xf32, #tpu.memory_space<vmem>>, vector<1x1x14x14xf32>,
    %c0_179 = arith.constant 0 : index
    %c1_180 = arith.constant 1 : index
    %388 = memref.load %arg7[%c0_179, %c1_180] : memref<1x8xf32, #tpu.memory_space<smem>>
    %389 = vector.broadcast %388 : f32 to vector<14x14xf32>
    %390 = arith.mulf %352, %389 : vector<14x14xf32>
    %c0_181 = arith.constant 0 : index
    %c1_182 = arith.constant 1 : index
    %391 = memref.load %arg8[%c0_181, %c1_182] : memref<1x8xf32, #tpu.memory_space<smem>>
    %392 = vector.broadcast %391 : f32 to vector<14x14xf32>
    %393 = arith.addf %390, %392 : vector<14x14xf32>
    %cst_183 = arith.constant 0.000000e+00 : f32
    %394 = vector.broadcast %cst_183 : f32 to vector<14x14xf32>
    %395 = arith.maximumf %393, %394 : vector<14x14xf32>
    %c0_184 = arith.constant 0 : index
    %c1_185 = arith.constant 1 : index
    %c0_186 = arith.constant 0 : index
    %c0_187 = arith.constant 0 : index
    %396 = vector.load %arg9[%c0_184, %c1_185, %c0_186, %c0_187] : memref<1x8x14x14xf32, #tpu.memory_space<vmem>>, vector<1x1x14x14xf32>
    %397 = vector.shape_cast %396 : vector<1x1x14x14xf32> to vector<14x14xf32>
    %398 = vector.shape_cast %395 : vector<14x14xf32> to vector<1x1x14x14xf32>
    tpu.vector_store %arg9[%c0_184, %c1_185, %c0_186, %c0_187], %398 {strides = array<i32>} : memref<1x8x14x14xf32, #tpu.memory_space<vmem>>, vector<1x1x14x14xf32>,
    %c0_188 = arith.constant 0 : index
    %c2_189 = arith.constant 2 : index
    %399 = memref.load %arg7[%c0_188, %c2_189] : memref<1x8xf32, #tpu.memory_space<smem>>
    %400 = vector.broadcast %399 : f32 to vector<14x14xf32>
    %401 = arith.mulf %356, %400 : vector<14x14xf32>
    %c0_190 = arith.constant 0 : index
    %c2_191 = arith.constant 2 : index
    %402 = memref.load %arg8[%c0_190, %c2_191] : memref<1x8xf32, #tpu.memory_space<smem>>
    %403 = vector.broadcast %402 : f32 to vector<14x14xf32>
    %404 = arith.addf %401, %403 : vector<14x14xf32>
    %cst_192 = arith.constant 0.000000e+00 : f32
    %405 = vector.broadcast %cst_192 : f32 to vector<14x14xf32>
    %406 = arith.maximumf %404, %405 : vector<14x14xf32>
    %c0_193 = arith.constant 0 : index
    %c2_194 = arith.constant 2 : index
    %c0_195 = arith.constant 0 : index
    %c0_196 = arith.constant 0 : index
    %407 = vector.load %arg9[%c0_193, %c2_194, %c0_195, %c0_196] : memref<1x8x14x14xf32, #tpu.memory_space<vmem>>, vector<1x1x14x14xf32>
    %408 = vector.shape_cast %407 : vector<1x1x14x14xf32> to vector<14x14xf32>
    %409 = vector.shape_cast %406 : vector<14x14xf32> to vector<1x1x14x14xf32>
    tpu.vector_store %arg9[%c0_193, %c2_194, %c0_195, %c0_196], %409 {strides = array<i32>} : memref<1x8x14x14xf32, #tpu.memory_space<vmem>>, vector<1x1x14x14xf32>,
    %c0_197 = arith.constant 0 : index
    %c3_198 = arith.constant 3 : index
    %410 = memref.load %arg7[%c0_197, %c3_198] : memref<1x8xf32, #tpu.memory_space<smem>>
    %411 = vector.broadcast %410 : f32 to vector<14x14xf32>
    %412 = arith.mulf %360, %411 : vector<14x14xf32>
    %c0_199 = arith.constant 0 : index
    %c3_200 = arith.constant 3 : index
    %413 = memref.load %arg8[%c0_199, %c3_200] : memref<1x8xf32, #tpu.memory_space<smem>>
    %414 = vector.broadcast %413 : f32 to vector<14x14xf32>
    %415 = arith.addf %412, %414 : vector<14x14xf32>
    %cst_201 = arith.constant 0.000000e+00 : f32
    %416 = vector.broadcast %cst_201 : f32 to vector<14x14xf32>
    %417 = arith.maximumf %415, %416 : vector<14x14xf32>
    %c0_202 = arith.constant 0 : index
    %c3_203 = arith.constant 3 : index
    %c0_204 = arith.constant 0 : index
    %c0_205 = arith.constant 0 : index
    %418 = vector.load %arg9[%c0_202, %c3_203, %c0_204, %c0_205] : memref<1x8x14x14xf32, #tpu.memory_space<vmem>>, vector<1x1x14x14xf32>
    %419 = vector.shape_cast %418 : vector<1x1x14x14xf32> to vector<14x14xf32>
    %420 = vector.shape_cast %417 : vector<14x14xf32> to vector<1x1x14x14xf32>
    tpu.vector_store %arg9[%c0_202, %c3_203, %c0_204, %c0_205], %420 {strides = array<i32>} : memref<1x8x14x14xf32, #tpu.memory_space<vmem>>, vector<1x1x14x14xf32>,
    %c0_206 = arith.constant 0 : index
    %c4_207 = arith.constant 4 : index
    %421 = memref.load %arg7[%c0_206, %c4_207] : memref<1x8xf32, #tpu.memory_space<smem>>
    %422 = vector.broadcast %421 : f32 to vector<14x14xf32>
    %423 = arith.mulf %364, %422 : vector<14x14xf32>
    %c0_208 = arith.constant 0 : index
    %c4_209 = arith.constant 4 : index
    %424 = memref.load %arg8[%c0_208, %c4_209] : memref<1x8xf32, #tpu.memory_space<smem>>
    %425 = vector.broadcast %424 : f32 to vector<14x14xf32>
    %426 = arith.addf %423, %425 : vector<14x14xf32>
    %cst_210 = arith.constant 0.000000e+00 : f32
    %427 = vector.broadcast %cst_210 : f32 to vector<14x14xf32>
    %428 = arith.maximumf %426, %427 : vector<14x14xf32>
    %c0_211 = arith.constant 0 : index
    %c4_212 = arith.constant 4 : index
    %c0_213 = arith.constant 0 : index
    %c0_214 = arith.constant 0 : index
    %429 = vector.load %arg9[%c0_211, %c4_212, %c0_213, %c0_214] : memref<1x8x14x14xf32, #tpu.memory_space<vmem>>, vector<1x1x14x14xf32>
    %430 = vector.shape_cast %429 : vector<1x1x14x14xf32> to vector<14x14xf32>
    %431 = vector.shape_cast %428 : vector<14x14xf32> to vector<1x1x14x14xf32>
    tpu.vector_store %arg9[%c0_211, %c4_212, %c0_213, %c0_214], %431 {strides = array<i32>} : memref<1x8x14x14xf32, #tpu.memory_space<vmem>>, vector<1x1x14x14xf32>,
    %c0_215 = arith.constant 0 : index
    %c5_216 = arith.constant 5 : index
    %432 = memref.load %arg7[%c0_215, %c5_216] : memref<1x8xf32, #tpu.memory_space<smem>>
    %433 = vector.broadcast %432 : f32 to vector<14x14xf32>
    %434 = arith.mulf %368, %433 : vector<14x14xf32>
    %c0_217 = arith.constant 0 : index
    %c5_218 = arith.constant 5 : index
    %435 = memref.load %arg8[%c0_217, %c5_218] : memref<1x8xf32, #tpu.memory_space<smem>>
    %436 = vector.broadcast %435 : f32 to vector<14x14xf32>
    %437 = arith.addf %434, %436 : vector<14x14xf32>
    %cst_219 = arith.constant 0.000000e+00 : f32
    %438 = vector.broadcast %cst_219 : f32 to vector<14x14xf32>
    %439 = arith.maximumf %437, %438 : vector<14x14xf32>
    %c0_220 = arith.constant 0 : index
    %c5_221 = arith.constant 5 : index
    %c0_222 = arith.constant 0 : index
    %c0_223 = arith.constant 0 : index
    %440 = vector.load %arg9[%c0_220, %c5_221, %c0_222, %c0_223] : memref<1x8x14x14xf32, #tpu.memory_space<vmem>>, vector<1x1x14x14xf32>
    %441 = vector.shape_cast %440 : vector<1x1x14x14xf32> to vector<14x14xf32>
    %442 = vector.shape_cast %439 : vector<14x14xf32> to vector<1x1x14x14xf32>
    tpu.vector_store %arg9[%c0_220, %c5_221, %c0_222, %c0_223], %442 {strides = array<i32>} : memref<1x8x14x14xf32, #tpu.memory_space<vmem>>, vector<1x1x14x14xf32>,
    %c0_224 = arith.constant 0 : index
    %c6_225 = arith.constant 6 : index
    %443 = memref.load %arg7[%c0_224, %c6_225] : memref<1x8xf32, #tpu.memory_space<smem>>
    %444 = vector.broadcast %443 : f32 to vector<14x14xf32>
    %445 = arith.mulf %372, %444 : vector<14x14xf32>
    %c0_226 = arith.constant 0 : index
    %c6_227 = arith.constant 6 : index
    %446 = memref.load %arg8[%c0_226, %c6_227] : memref<1x8xf32, #tpu.memory_space<smem>>
    %447 = vector.broadcast %446 : f32 to vector<14x14xf32>
    %448 = arith.addf %445, %447 : vector<14x14xf32>
    %cst_228 = arith.constant 0.000000e+00 : f32
    %449 = vector.broadcast %cst_228 : f32 to vector<14x14xf32>
    %450 = arith.maximumf %448, %449 : vector<14x14xf32>
    %c0_229 = arith.constant 0 : index
    %c6_230 = arith.constant 6 : index
    %c0_231 = arith.constant 0 : index
    %c0_232 = arith.constant 0 : index
    %451 = vector.load %arg9[%c0_229, %c6_230, %c0_231, %c0_232] : memref<1x8x14x14xf32, #tpu.memory_space<vmem>>, vector<1x1x14x14xf32>
    %452 = vector.shape_cast %451 : vector<1x1x14x14xf32> to vector<14x14xf32>
    %453 = vector.shape_cast %450 : vector<14x14xf32> to vector<1x1x14x14xf32>
    tpu.vector_store %arg9[%c0_229, %c6_230, %c0_231, %c0_232], %453 {strides = array<i32>} : memref<1x8x14x14xf32, #tpu.memory_space<vmem>>, vector<1x1x14x14xf32>,
    %c0_233 = arith.constant 0 : index
    %c7_234 = arith.constant 7 : index
    %454 = memref.load %arg7[%c0_233, %c7_234] : memref<1x8xf32, #tpu.memory_space<smem>>
    %455 = vector.broadcast %454 : f32 to vector<14x14xf32>
    %456 = arith.mulf %376, %455 : vector<14x14xf32>
    %c0_235 = arith.constant 0 : index
    %c7_236 = arith.constant 7 : index
    %457 = memref.load %arg8[%c0_235, %c7_236] : memref<1x8xf32, #tpu.memory_space<smem>>
    %458 = vector.broadcast %457 : f32 to vector<14x14xf32>
    %459 = arith.addf %456, %458 : vector<14x14xf32>
    %cst_237 = arith.constant 0.000000e+00 : f32
    %460 = vector.broadcast %cst_237 : f32 to vector<14x14xf32>
    %461 = arith.maximumf %459, %460 : vector<14x14xf32>
    %c0_238 = arith.constant 0 : index
    %c7_239 = arith.constant 7 : index
    %c0_240 = arith.constant 0 : index
    %c0_241 = arith.constant 0 : index
    %462 = vector.load %arg9[%c0_238, %c7_239, %c0_240, %c0_241] : memref<1x8x14x14xf32, #tpu.memory_space<vmem>>, vector<1x1x14x14xf32>
    %463 = vector.shape_cast %462 : vector<1x1x14x14xf32> to vector<14x14xf32>
    %464 = vector.shape_cast %461 : vector<14x14xf32> to vector<1x1x14x14xf32>
    tpu.vector_store %arg9[%c0_238, %c7_239, %c0_240, %c0_241], %464 {strides = array<i32>} : memref<1x8x14x14xf32, #tpu.memory_space<vmem>>, vector<1x1x14x14xf32>,
    return
  }
  func.func @transform_0(%arg0: i32, %arg1: i32) -> (i32, i32, i32, i32) {
    %c0_i32 = arith.constant 0 : i32
    %c0_i32_0 = arith.constant 0 : i32
    %c0_i32_1 = arith.constant 0 : i32
    %c0_i32_2 = arith.constant 0 : i32
    return %arg0, %c0_i32, %c0_i32_0, %c0_i32_1 : i32, i32, i32, i32
  }
  func.func @transform_1(%arg0: i32, %arg1: i32) -> (i32, i32) {
    %c0_i32 = arith.constant 0 : i32
    %c0_i32_0 = arith.constant 0 : i32
    %c0_i32_1 = arith.constant 0 : i32
    return %c0_i32, %c0_i32_0 : i32, i32
  }
  func.func @transform_2(%arg0: i32, %arg1: i32) -> (i32, i32) {
    %c0_i32 = arith.constant 0 : i32
    %c0_i32_0 = arith.constant 0 : i32
    %c0_i32_1 = arith.constant 0 : i32
    return %c0_i32, %c0_i32_0 : i32, i32
  }
  func.func @transform_3(%arg0: i32, %arg1: i32) -> (i32, i32) {
    %c0_i32 = arith.constant 0 : i32
    %c0_i32_0 = arith.constant 0 : i32
    %c0_i32_1 = arith.constant 0 : i32
    return %c0_i32, %c0_i32_0 : i32, i32
  }
  func.func @transform_4(%arg0: i32, %arg1: i32) -> (i32, i32) {
    %c0_i32 = arith.constant 0 : i32
    %c0_i32_0 = arith.constant 0 : i32
    %c0_i32_1 = arith.constant 0 : i32
    return %c0_i32, %c0_i32_0 : i32, i32
  }
  func.func @transform_5(%arg0: i32, %arg1: i32) -> (i32, i32) {
    %c0_i32 = arith.constant 0 : i32
    %c0_i32_0 = arith.constant 0 : i32
    %c0_i32_1 = arith.constant 0 : i32
    return %c0_i32, %c0_i32_0 : i32, i32
  }
  func.func @transform_6(%arg0: i32, %arg1: i32) -> (i32, i32) {
    %c0_i32 = arith.constant 0 : i32
    %c0_i32_0 = arith.constant 0 : i32
    %c0_i32_1 = arith.constant 0 : i32
    return %c0_i32, %c0_i32_0 : i32, i32
  }
  func.func @transform_7(%arg0: i32, %arg1: i32) -> (i32, i32, i32, i32) {
    %c0_i32 = arith.constant 0 : i32
    %c0_i32_0 = arith.constant 0 : i32
    %c0_i32_1 = arith.constant 0 : i32
    return %arg0, %c0_i32, %arg1, %c0_i32_0 : i32, i32, i32, i32
  }
}

</mosaic_0001>

<bundles_post_ra>
// kernel: tpu_custom_call.1
= control target key start
LH: loop header
LB: loop body
LE: loop exit
PB: predicated region body
PF: predicated region fallthrough
CT: control target
= control target key end

     0   :  { %s3113_s0 = inlined_call_operand.hbm [shape: f32[2,4,16,16], index: 0, kind: input, shape index: {}]   ;;  %s3114_s1 = inlined_call_operand.vmem [shape: f32[9,4], index: 1, kind: input, shape index: {}]   ;;  %s3115_s2 = inlined_call_operand.vmem [shape: f32[1,4], index: 2, kind: input, shape index: {}]   ;;  %s3116_s3 = inlined_call_operand.vmem [shape: f32[1,4], index: 3, kind: input, shape index: {}]   ;;  %s3117_s4 = inlined_call_operand.vmem [shape: f32[4,8], index: 4, kind: input, shape index: {}]   ;;  %s3118_s5 = inlined_call_operand.vmem [shape: f32[1,8], index: 5, kind: input, shape index: {}]   ;;  %s3119_s6 = inlined_call_operand.vmem [shape: f32[1,8], index: 6, kind: input, shape index: {}]   ;;  %s3120_s7 = inlined_call_operand.vmem [shape: f32[2,8,14,14], index: 7, kind: output, shape index: {}]  }
   0x1   :  { %3138 = sst [smem:[#allocation30_spill]] %s3113_s0 }
   0x2   :  { %3139 = sst [smem:[#allocation31_spill]] %s3114_s1 }
   0x3   :  { %3140 = sst [smem:[#allocation32_spill]] %s3115_s2 }
   0x4   :  { %3141 = sst [smem:[#allocation33_spill]] %s3116_s3 }
   0x5   :  { %3142 = sst [smem:[#allocation34_spill]] %s3117_s4 }
   0x6   :  { %3143 = sst [smem:[#allocation35_spill]] %s3118_s5 }
   0x7   :  { %3144 = sst [smem:[#allocation36_spill]] %s3119_s6 }
   0x8   :  { %3145 = sst [smem:[#allocation37_spill]] %s3120_s7 }
   0x9   :  { %12 = vsyncpa [#allocation3], 0 }
   0xa   :  { %14 = vsyncpa [#allocation3 + $0x1], 0 }
   0xb   :  { %15 = vsyncpa [#allocation4], 0 }
   0xc   :  { %16 = vsyncpa [#allocation7], 0 }
   0xd   :  { %17 = vsyncpa [#allocation10], 0 }
   0xe   :  { %18 = vsyncpa [#allocation13], 0  ;;  %s1923_s24 = smov 0   ;;  %s1925_s25 = smov 0  }
   0xf   :  { %s1927_s26 = smov 0   ;;  %s1929_s27 = smov 0  }
  0x10   :  { %s1931_s28 = smov 0   ;;  %s1933_s29 = smov 0  }
  0x11 LB: > { %3146 = sst [smem:[#allocation19_spill]] %s1854_s25  ;;  %s3151_s2 = sld [smem:[#allocation32_spill]]  ;;  %s1870_s29 = sphi %s1933_s29, %s24_s29   ;;  %s1866_s28 = sphi %s1931_s28, %s3185_s28   ;;  %s1862_s27 = sphi %s1929_s27, %s3184_s27   ;;  %s1858_s26 = sphi %s1927_s26, %s3183_s26   ;;  %s1854_s25 = sphi %s1925_s25, %s3182_s25   ;;  %s1850_s24 = sphi %s1923_s24, %s3181_s24  }
  0x12   : > { %3147 = sst [smem:[#allocation20_spill]] %s1858_s26  ;;  %s1431_s10 = sadd.s32 4294967295, %s1870_s29  }
  0x13   : > { %3148 = sst [smem:[#allocation21_spill]] %s1862_s27  ;;  %p1433_p0 = scmp.ge.s32.totalorder %s1870_s29, 1 }
  0x14   : > { %3149 = sst [smem:[#allocation22_spill]] %s1866_s28  ;;  %p1958_p1 = scmp.eq.s32.totalorder %s1431_s10, 0 }
  0x15   : > { %3150 = sst [smem:[#allocation23_spill]] %s1870_s29  ;;  %p221_p2 = scmp.lt.s32.totalorder %s1870_s29, 3 }
  0x16   : > { %s3152_s11 = scalar_select %p1958_p1, 1, 0 }
  0x17   : > { %s247_s9 = sshll.u32 %s3151_s2, 4  ;;  %p1963_p3 = pnand %p1433_p0, %p221_p2  ;;  %s248_s9 = int_to_ptr.vmem [resolvable:$true] %s247_s9 }
  0x18   : > { %s3154_s4 = sld [smem:[#allocation34_spill]]  ;;  %s3155_s1 = sld [smem:[#allocation31_spill]] }
  0x19   : > { %s3153_s12 = scalar_select %p1963_p3, 1, 0 }
  0x1a   : > { %p1590_p4 = pneg %p1963_p3  ;;  %s1684_s20 = scalar_lea.vmem %s248_s9, 16 }
  0x1b   : > { %p1685_p6 = scmp.ne.s32.totalorder %s248_s9, %s1684_s20  ;;  %p1692_p10 = scmp.lt.s32.totalorder %s248_s9, %s248_s9 }
  0x1c   : > { %p1977_p5 = pnand %p1590_p4, %p1958_p1  ;;  %p1693_p11 = scmp.lt.s32.totalorder %s1684_s20, %s1684_s20 }
  0x1e   : > { %s269_s15 = sshll.u32 %s3154_s4, 4  ;;  %s233_s18 = sshll.u32 %s3155_s1, 4  ;;  %s270_s15 = int_to_ptr.vmem [resolvable:$true] %s269_s15  ;;  %s1981_s18 = int_to_ptr.vmem [resolvable:$true] %s233_s18 }
  0x1f   : > { %p1985_p7 = pneg %p1977_p5  ;;  %p1694_p12 = por %p1693_p11, %p1692_p10 }
  0x21   : > { %p1687_p8 = pnand %p1985_p7, %p1685_p6 }
  0x23   : > { %p1688_p9 = pneg %p1687_p8 }
  0x25   : > { %p1695_p13 = pnand %p1694_p12, %p1688_p9 }
  0x27   : > { %1698 = shalt.err (!%p1695_p13)
}
  0x28   : > { %s1872_s22 = smov [#allocation6]   ;;  %s1699_s23 = scalar_lea.vmem %s270_s15, 64 }
  0x29   : > { %1596 = dma.vmem_to_smem (!%p1977_p5), %s248_s9, 16, %s1872_s22, [#allocation7]  }
  0x2a   : > { %p1700_p0 = scmp.ne.s32.totalorder %s270_s15, %s1699_s23  ;;  %p1707_p3 = scmp.lt.s32.totalorder %s270_s15, %s270_s15 }
  0x2b   : > { %p1708_p1 = scmp.lt.s32.totalorder %s1699_s23, %s1699_s23 }
  0x2c   : > { %p1702_p2 = pnand %p1700_p0, %p1985_p7 }
  0x2d   : > { %p1709_p6 = por %p1708_p1, %p1707_p3 }
  0x2e   : > { %p1703_p4 = pneg %p1702_p2 }
  0x30   : > { %p1710_p8 = pnand %p1709_p6, %p1703_p4 }
  0x32   : > { %1713 = shalt.err (!%p1710_p8)
}
  0x33   : > { %s1873_s30 = smov [#allocation9]   ;;  %s3158_s3 = sld [smem:[#allocation33_spill]] }
  0x34   : > { %1602 = dma.vmem_to_smem (!%p1977_p5), %s270_s15, 64, %s1873_s30, [#allocation10]  }
  0x35   : > { %s1714_s13 = scalar_lea.vmem %s1981_s18, 256  ;;  %p1722_p1 = scmp.lt.s32.totalorder %s1981_s18, %s1981_s18 }
  0x36   : > { %p1715_p9 = scmp.ne.s32.totalorder %s1981_s18, %s1714_s13  ;;  %p1723_p3 = scmp.lt.s32.totalorder %s1714_s13, %s1714_s13 }
  0x38   : > { %p1717_p10 = pnand %p1715_p9, %p1985_p7  ;;  %p1724_p12 = por %p1723_p3, %p1722_p1 }
  0x39   : > { %s258_s10 = sshll.u32 %s3158_s3, 4  ;;  %s259_s10 = int_to_ptr.vmem [resolvable:$true] %s258_s10 }
  0x3a   : > { %p1718_p11 = pneg %p1717_p10 }
  0x3c   : > { %p1725_p13 = pnand %p1724_p12, %p1718_p11 }
  0x3e   : > { %1728 = shalt.err (!%p1725_p13)
}
  0x3f   : > { %s1874_s14 = smov [#allocation5]   ;;  %s1875_s15 = smov 128  }
  0x40   : > { %s1876_s16 = smov 8   ;;  %s1729_s17 = scalar_lea.vmem %s259_s10, 16 }
  0x41   : > { %1593 = dma.vmem_to_smem (!%p1977_p5), %s1981_s18, 256, %s1874_s14, [#allocation4], %s1875_s15, %s1875_s15, %s1876_s16  }
  0x42   : > { %p1730_p0 = scmp.ne.s32.totalorder %s259_s10, %s1729_s17  ;;  %p1737_p6 = scmp.lt.s32.totalorder %s259_s10, %s259_s10 }
  0x43   : > { %p1738_p8 = scmp.lt.s32.totalorder %s1729_s17, %s1729_s17 }
  0x44   : > { %p1732_p2 = pnand %p1730_p0, %p1985_p7 }
  0x45   : > { %p1739_p9 = por %p1738_p8, %p1737_p6 }
  0x46   : > { %p1733_p4 = pneg %p1732_p2 }
  0x48   : > { %p1740_p10 = pnand %p1739_p9, %p1733_p4 }
  0x4a   : > { %1743 = shalt.err (!%p1740_p10)
}
  0x4b   : > { %s1877_s20 = smov [#allocation8]   ;;  %s3159_s5 = sld [smem:[#allocation35_spill]] }
  0x4c   : > { %1599 = dma.vmem_to_smem (!%p1977_p5), %s259_s10, 16, %s1877_s20, [#allocation7]  }
  0x4d   : > { %s3160_s6 = sld [smem:[#allocation36_spill]] }
  0x51   : > { %s280_s18 = sshll.u32 %s3159_s5, 4  ;;  %s281_s18 = int_to_ptr.vmem [resolvable:$true] %s280_s18 }
  0x52   : > { %s1744_s13 = scalar_lea.vmem %s281_s18, 16  ;;  %p1752_p12 = scmp.lt.s32.totalorder %s281_s18, %s281_s18 }
  0x53   : > { %s291_s9 = sshll.u32 %s3160_s6, 4  ;;  %p1745_p11 = scmp.ne.s32.totalorder %s281_s18, %s1744_s13  ;;  %s292_s9 = int_to_ptr.vmem [resolvable:$true] %s291_s9 }
  0x54   : > { %p1753_p13 = scmp.lt.s32.totalorder %s1744_s13, %s1744_s13 }
  0x55   : > { %p1747_p1 = pnand %p1745_p11, %p1985_p7 }
  0x56   : > { %p1754_p0 = por %p1753_p13, %p1752_p12 }
  0x57   : > { %p1748_p3 = pneg %p1747_p1 }
  0x59   : > { %p1755_p2 = pnand %p1754_p0, %p1748_p3 }
  0x5b   : > { %1758 = shalt.err (!%p1755_p2)
}
  0x5c   : > { %s1878_s10 = smov [#allocation11]   ;;  %s1759_s14 = scalar_lea.vmem %s292_s9, 16 }
  0x5d   : > { %1605 = dma.vmem_to_smem (!%p1977_p5), %s281_s18, 16, %s1878_s10, [#allocation10]  }
  0x5e   : > { %p1760_p4 = scmp.ne.s32.totalorder %s292_s9, %s1759_s14  ;;  %p1767_p9 = scmp.lt.s32.totalorder %s292_s9, %s292_s9 }
  0x5f   : > { %p1768_p10 = scmp.lt.s32.totalorder %s1759_s14, %s1759_s14 }
  0x60   : > { %p1762_p6 = pnand %p1760_p4, %p1985_p7 }
  0x61   : > { %p1769_p11 = por %p1768_p10, %p1767_p9 }
  0x62   : > { %p1763_p8 = pneg %p1762_p6 }
  0x64   : > { %p1770_p1 = pnand %p1769_p11, %p1763_p8 }
  0x66   : > { %1773 = shalt.err (!%p1770_p1)
}
  0x67   : > { %s1879_s17 = smov [#allocation12]   ;;  %s36_s21 = sadd.s32 1, %s1866_s28 }
  0x68   : > { %1608 = dma.vmem_to_smem (!%p1977_p5), %s292_s9, 16, %s1879_s17, [#allocation13]  }
  0x69   : > { %s43_s20 = sadd.s32 1, %s1858_s26  ;;  %p38_p7 = scmp.ge.s32.totalorder %s36_s21, 2 }
  0x6a   : > { %p50_p3 = scmp.ne.s32.totalorder %s1858_s26, %s1854_s25  ;;  %p51_p12 = scmp.eq.s32.totalorder %s1870_s29, 0 }
  0x6b   : > { %p56_p13 = scmp.ne.s32.totalorder %s1854_s25, %s1850_s24  ;;  %s3187_s21 = smov (%p38_p7, %s36_s21), 0 }
  0x6c   : > { %3161 = sst [smem:[#allocation24_spill]] %s3187_s21  ;;  %p2039_p0 = por %p51_p12, %p50_p3 }
  0x6d   : > { %p3163_p2 = scmp.ne.s32.totalorder %s3152_s11, 0  ;;  %s40_s23 = ssub.s32 %s1866_s28, %s3187_s21 }
  0x6e   : > { %p1619_p5 = scmp.lt.s32.totalorder %s1870_s29, 2  ;;  %p41_p6 = scmp.eq.s32.totalorder %s40_s23, 0 }
  0x6f   : > { %p2045_p4 = por %p3163_p2, %p56_p13  ;;  %s302_s18 = sand.u32 1, %s1858_s26  }
  0x70   : > { %s1441_s30 = sshll.u32 %s302_s18, 6  ;;  %s1562_s24 = sshll.u32 %s1866_s28, 10 }
  0x71   : > { %s2054_s8 = scalar_select %p41_p6, %s1858_s26, %s43_s20  }
  0x72   : > { %s3166_s0 = sld [smem:[#allocation30_spill]]  ;;  %s306_s14 = scalar_lea.vmem [#allocation2], %s1441_s30 }
  0x73   : > { %3165 = sst [smem:[#allocation25_spill]] %s2054_s8  ;;  %s313_s17 = sshll.u32 %s306_s14, 4  ;;  %s2062_s17 = int_to_ptr.vmem [resolvable:$true] %s313_s17 }
  0x74   : > { %p2066_p8 = pnand %p1619_p5, %p2039_p0  ;;  %s2070_s20 = scalar_lea.sflag [#allocation3], %s302_s18 }
  0x76   : > { %p1776_p10 = pneg %p2066_p8 }
  0x78   : > { %s2060_s10 = scalar_lea.hbm %s3166_s0, %s1562_s24  ;;  %s1779_s19 = scalar_lea.hbm %s3166_s0, 2048 }
  0x79   : > { %s1774_s9 = scalar_lea.hbm %s2060_s10, 1024  ;;  %p1780_p7 = scmp.lt.u32.totalorder %s2060_s10, %s3166_s0 }
  0x7a   : > { %p1775_p9 = scmp.ne.s32.totalorder %s2060_s10, %s1774_s9  ;;  %p1781_p3 = scmp.lt.u32.totalorder %s1779_s19, %s1774_s9 }
  0x7b   : > { %p1783_p13 = scmp.lt.u32.totalorder %s1774_s9, %s2060_s10 }
  0x7c   : > { %p1777_p11 = pnand %p1776_p10, %p1775_p9  ;;  %p1782_p12 = por %p1781_p3, %p1780_p7 }
  0x7e   : > { %p1778_p1 = pneg %p1777_p11  ;;  %p1784_p0 = por %p1783_p13, %p1782_p12 }
  0x80   : > { %p1785_p2 = pnand %p1784_p0, %p1778_p1 }
  0x82   : > { %1788 = shalt.err (!%p1785_p2)
}
  0x83   : > { %s1789_s18 = scalar_lea.vmem %s2062_s17, 1024  ;;  %s1880_s30 = smov [#allocation2]  }
  0x84   : > { %p1790_p5 = scmp.ne.s32.totalorder %s2062_s17, %s1789_s18  ;;  %s1794_s24 = sshll.u32 %s1880_s30, 4  ;;  %s1795_s24 = int_to_ptr.vmem [resolvable:$false] %s1794_s24 }
  0x85   : > { %s1796_s13 = scalar_lea.vmem %s1795_s24, 2048  ;;  %p1797_p11 = scmp.lt.s32.totalorder %s2062_s17, %s1795_s24 }
  0x86   : > { %p1792_p6 = pnand %p1790_p5, %p1776_p10  ;;  %p1798_p7 = scmp.lt.s32.totalorder %s1796_s13, %s1789_s18 }
  0x88   : > { %p1793_p9 = pneg %p1792_p6  ;;  %p1799_p3 = por %p1798_p7, %p1797_p11 }
  0x8a   : > { %p1800_p12 = pnand %p1799_p3, %p1793_p9 }
  0x8c   : > { %1803 = shalt.err (!%p1800_p12)
}
  0x8d   : > { %1612 = dma.hbm_to_vmem [thread:$0]  (!%p2066_p8), %s2060_s10, 1024, %s2062_s17, %s2070_s20, %s1875_s15, %s1875_s15, %s1876_s16  }
  0x8e   : > { %p3168_p10 = scmp.ne.s32.totalorder %s3153_s12, 0 }
  0x90   : > { %325 = sbr.rel (%p3168_p10) target bundleno = 423 (0x1a7), region = 48 }
  0x97   : > { %s327_s9 = sand.u32 1, %s1854_s25  }
  0x98   : > { %s1445_s19 = sshll.u32 %s327_s9, 6  ;;  %s328_s14 = scalar_lea.sflag [#allocation3], %s327_s9 }
  0x99   : > { %s2104_s18 = scalar_lea.vmem [#allocation2], %s1445_s19 }
  0x9a   : > { %1829 = dma.done.wait (%p2045_p4), %s328_s14, 1024  }
  0x9b   : > { %1831 = vsyncadd (%p2045_p4), %s328_s14, 4294966272  ;;  %p3169_p1 = scmp.ne.s32.totalorder %s3152_s11, 0 }
  0x9d   : > { %1833 = dma.done.wait (%p3169_p1), [#allocation4], 256  }
  0x9e   : > { %1835 = vsyncadd (%p3169_p1), [#allocation4], 4294967040 }
  0x9f   : > { %1837 = dma.done.wait (%p3169_p1), [#allocation7], 32  }
  0xa0   : > { %1839 = vsyncadd (%p3169_p1), [#allocation7], 4294967264 }
  0xa1   : > { %1841 = dma.done.wait (%p3169_p1), [#allocation10], 80  }
  0xa2   : > { %1843 = vsyncadd (%p3169_p1), [#allocation10], 4294967216 }
  0xa3   : > { %1845 = dma.done.wait (%p3169_p1), [#allocation13], 16  }
  0xa4   : > { %1847 = vsyncadd (%p3169_p1), [#allocation13], 4294967280 }
  0xa5   : > { %360 = sfence }
  0xa6   : > { %s1474_s12 = sld [smem:[#allocation5 + $0x81]]  ;;  %s1456_s15 = sld [smem:[#allocation5 + $0x80]]  ;;  %v2127_v0 = vld [vmem:[%s2104_s18 + $0x10] sm:$0xff]  ;;  %v2130_v1 = vld [vmem:[%s2104_s18] sm:$0xff]  ;;  %v2133_v2 = vld [vmem:[%s2104_s18 + $0x8] sm:$0xff]  ;;  %vm417_vm0 = vcmask 1046528  }
  0xa7   : > { %s1457_s16 = sld [smem:[#allocation5 + $0x200]]  ;;  %s1475_s22 = sld [smem:[#allocation5 + $0x201]]  ;;  %v2136_v4 = vld [vmem:[%s2104_s18 + $0x18] sm:$0xff]  ;;  %v2163_v22 = vld [vmem:[%s2104_s18 + $0x28] sm:$0xff]  ;;  %v2168_v26 = vld [vmem:[%s2104_s18 + $0x20] sm:$0xff]  ;;  %vm431_vm1 = vcmask 1045504  }
  0xa8   : > { %s2139_s11 = sld [smem:[#allocation5 + $0x380]]  ;;  %s1881_s10 = smov 127   ;;  %v2209_v45 = vld [vmem:[%s2104_s18 + $0x38] sm:$0xff]  ;;  %v2217_v49 = vld [vmem:[%s2104_s18 + $0x30] sm:$0xff]  ;;  %vm1175_vm2 = vcmask 111616   ;;  %vm1173_vm3 = vcmask 113664  }
  0xa9   : > { %s1495_s17 = sld [smem:[#allocation5 + $0x82]]  ;;  %s2149_s23 = sld [smem:[#allocation5 + $0x381]] }
  0xaa   : > { %s2155_s20 = sld [smem:[#allocation5 + $0x202]]  ;;  %s2158_s30 = sld [smem:[#allocation5 + $0x400]] }
  0xab   : > { %s2171_s24 = sld [smem:[#allocation5 + $0x401]]  ;;  %s2176_s13 = sld [smem:[#allocation5 + $0x83]] }
  0xac   : > { %v630_v3 = vstv %s1474_s12  ;;  %v440_v6 = vstv %s1456_s15  ;;  %s2178_s9 = sld [smem:[#allocation5 + $0x100]]  ;;  %s2185_s19 = sld [smem:[#allocation5 + $0x101]] }
  0xad   : > { %v631_v5 = vmul.f32 %v2127_v0, %v630_v3  ;;  %v454_v7 = vstv %s1457_s16  ;;  %v441_v8 = vmul.f32 %v440_v6, %v2130_v1  ;;  %v644_v10 = vstv %s1475_s22  ;;  %s2187_s14 = sld [smem:[#allocation5 + $0x402]]  ;;  %s2196_s15 = sld [smem:[#allocation5 + $0x203]] }
  0xae   : > { %v456_v9 = vmul.f32 %v454_v7, %v2133_v2  ;;  %v442_v11 = vmul.f32 %v440_v6, %v2133_v2  ;;  %v455_v13 = vmul.f32 %v454_v7, %v2130_v1  ;;  %v646_v14 = vmul.f32 %v2136_v4, %v644_v10  ;;  %s2190_s12 = sld [smem:[#allocation5 + $0x382]]  ;;  %s2204_s16 = sld [smem:[#allocation5 + $0x1]] }
  0xaf   : > { %635 = vrot.lane.b32.xlu1 %v631_v5, %s1881_s10  ;;  %445 = vrot.lane.b32.xlu0 %v441_v8, %s1881_s10  ;;  %v645_v15 = vmul.f32 %v2127_v0, %v644_v10  ;;  %v632_v17 = vmul.f32 %v2136_v4, %v630_v3  ;;  %v471_v20 = vstv %s2139_s11  ;;  %v820_v23 = vstv %s1495_s17  ;;  %s2206_s22 = sld [smem:[#allocation5 + $0x181]]  ;;  %s2211_s11 = sld [smem:[#allocation5 + $0x280]] }
  0xb0   : > { %v460_v12 = vrot.slane %v456_v9, 1  ;;  %v650_v16 = vrot.slane %v646_v14, 1  ;;  %v459_v18 = vrot.slane %v455_v13, 1  ;;  %v473_v24 = vmul.f32 %v471_v20, %v2133_v2  ;;  %s2224_s17 = sld [smem:[#allocation5 + $0x301]]  ;;  %s2235_s18 = sld [smem:[#allocation5]] }
  0xb1   : > { %v649_v19 = vrot.slane %v645_v15, 1  ;;  %v472_v27 = vmul.f32 %v471_v20, %v2130_v1  ;;  %v661_v28 = vstv %s2149_s23  ;;  %v822_v29 = vmul.f32 %v2163_v22, %v820_v23  ;;  %s2237_s23 = sld [smem:[#allocation5 + $0x180]]  ;;  %s2583_s0 = sld [smem:[#allocation9 + $0x84]] }
  0xb2   : > { %v461_v21 = vsel %vm417_vm0, %v459_v18, %v460_v12  ;;  %v821_v30 = vmul.f32 %v2168_v26, %v820_v23  ;;  %v477_v31 = vrot.slane %v473_v24, 2  ;;  %v662_v33 = vmul.f32 %v2127_v0, %v661_v28  ;;  %s2585_s1 = sld [smem:[#allocation9 + $0x85]]  ;;  %s2587_s2 = sld [smem:[#allocation9 + $0x86]] }
  0xb3   : > { %464 = vrot.lane.b32.xlu1 %v460_v12, %s1881_s10  ;;  %447 = vrot.lane.b32.xlu0 %v442_v11, %s1881_s10  ;;  %v651_v25 = vsel %vm417_vm0, %v649_v19, %v650_v16  ;;  %v476_v32 = vrot.slane %v472_v27, 2  ;;  %v663_v34 = vmul.f32 %v2136_v4, %v661_v28  ;;  %v834_v35 = vstv %s2155_s20  ;;  %s2245_s20 = sld [smem:[#allocation5 + $0x300]]  ;;  %s2589_s3 = sld [smem:[#allocation9 + $0x87]] }
  0xb4   : > { %v519_v36 = vstv %s2158_s30  ;;  %v835_v37 = vmul.f32 %v2168_v26, %v834_v35  ;;  %v836_v38 = vmul.f32 %v2163_v22, %v834_v35  ;;  %v666_v43 = vrot.slane %v662_v33, 2  ;;  %s2278_s30 = sld [smem:[#allocation5 + $0x2]]  ;;  %s2605_s6 = sld [smem:[#allocation9 + $0x100]] }
  0xb5   : > { %v520_v39 = vmul.f32 %v519_v36, %v2130_v1  ;;  %v2200_v40 = vmul.f32 %v519_v36, %v2133_v2  ;;  %v478_v41 = vsel %vm431_vm1, %v476_v32, %v477_v31  ;;  %v667_v42 = vrot.slane %v663_v34, 2  ;;  %s2593_s4 = sld [smem:[#allocation6 + $0x2]]  ;;  %s2607_s21 = sld [smem:[#allocation9 + $0x101]] }
  0xb6   : > { %v709_v44 = vstv %s2171_s24  ;;  %v1010_v48 = vstv %s2176_s13  ;;  %v488_v50 = vstv %s2178_s9  ;;  %v840_v53 = vrot.slane %v836_v38, 1  ;;  %s2280_s24 = sld [smem:[#allocation5 + $0x182]]  ;;  %s2304_s13 = sld [smem:[#allocation5 + $0x281]] }
  0xb7   : > { %654 = vrot.lane.b32.xlu1 %v650_v16, %s1881_s10  ;;  %637 = vrot.lane.b32.xlu0 %v632_v17, %s1881_s10  ;;  %v525_v46 = vrot.slane %v2200_v40, 2  ;;  %v524_v47 = vrot.slane %v520_v39, 2  ;;  %v710_v51 = vmul.f32 %v2127_v0, %v709_v44  ;;  %v2222_v52 = vmul.f32 %v2136_v4, %v709_v44  ;;  %s2309_s9 = sld [smem:[#allocation5 + $0x302]]  ;;  %s2615_s8 = sld [smem:[#allocation9 + $0x103]] }
  0xb8   : > { %v839_v54 = vrot.slane %v835_v37, 1  ;;  %v668_v56 = vsel %vm431_vm1, %v666_v43, %v667_v42  ;;  %v678_v57 = vstv %s2185_s19  ;;  %v1012_v60 = vmul.f32 %v2209_v45, %v1010_v48  ;;  %s2316_s19 = sld [smem:[#allocation5 + $0x3]]  ;;  %s2595_s5 = sld [smem:[#allocation8 + $0x2]] }
  0xb9   : > { %v2230_v55 = vsel %vm431_vm1, %v524_v47, %v525_v46  ;;  %v715_v58 = vrot.slane %v2222_v52, 2  ;;  %v714_v59 = vrot.slane %v710_v51, 2  ;;  %v1011_v61 = vmul.f32 %v2217_v49, %v1010_v48  ;;  %3171 = sst [smem:[#allocation27_spill]] %s2589_s3  ;;  %s2613_s28 = sld [smem:[#allocation9 + $0x102]] }
  0xba   : > { %v2242_v62 = vmul.f32 %v488_v50, %v2133_v2  ;;  %v899_v63 = vstv %s2187_s14  ;;  %v851_v3 = vstv %s2190_s12  ;;  %v841_v8 = vsel %vm417_vm0, %v839_v54, %v840_v53  ;;  %s2329_s14 = sld [smem:[#allocation5 + $0x183]]  ;;  %s2623_s26 = sld [smem:[#allocation9 + $0x105]] }
  0xbb   : > { %462 = vrot.lane.b32.xlu1 %v461_v21, %s1881_s10  ;;  %652 = vrot.lane.b32.xlu0 %v651_v25, %s1881_s10  ;;  %v2252_v5 = vsel %vm431_vm1, %v714_v59, %v715_v58  ;;  %v900_v6 = vmul.f32 %v2168_v26, %v899_v63  ;;  %v2256_v7 = vmul.f32 %v2163_v22, %v899_v63  ;;  %v1024_v11 = vstv %s2196_s15  ;;  %s2331_s12 = sld [smem:[#allocation5 + $0x303]]  ;;  %s1882_s15 = smov 126  }
  0xbc   : > { %v489_v9 = vmul.f32 %v488_v50, %v2130_v1  ;;  %v2262_v10 = vmul.f32 %v2136_v4, %v678_v57  ;;  %v598_v14 = vstv %s2204_s16  ;;  %v604_v15 = vstv %s2206_s22  ;;  %s2396_s22 = sld [smem:[#allocation5 + $0x383]]  ;;  %s2542_s16 = sld [smem:[#allocation8]] }
  0xbd   : > { %v905_v12 = vrot.slane %v2256_v7, 2  ;;  %v904_v13 = vrot.slane %v900_v6, 2  ;;  %v2269_v16 = vmul.f32 %v2127_v0, %v678_v57  ;;  %v2272_v17 = vmul.f32 %v2168_v26, %v851_v3  ;;  %s2631_s25 = sld [smem:[#allocation9 + $0x106]]  ;;  %s2633_s29 = sld [smem:[#allocation9 + $0x107]] }
  0xbe   : > { %v2275_v18 = vmul.f32 %v2163_v22, %v851_v3  ;;  %v502_v19 = vstv %s2211_s11  ;;  %v605_v21 = vmul.f32 %v2127_v0, %v604_v15  ;;  %v2290_v23 = vmul.f32 %v2136_v4, %v604_v15  ;;  %s1498_s11 = sld [smem:[#allocation5 + $0x102]]  ;;  %s2644_s7 = sld [smem:[#allocation6 + $0x3]] }
  0xbf   : > { %827 = vrot.lane.b32.xlu1 %v822_v29, %s1881_s10  ;;  %825 = vrot.lane.b32.xlu0 %v821_v30, %s1881_s10  ;;  %v2286_v20 = vsel %vm431_vm1, %v904_v13, %v905_v12  ;;  %v617_v24 = vstv %s2224_s17  ;;  %v2295_v25 = vmul.f32 %v2217_v49, %v1024_v11  ;;  %v599_v27 = vmul.f32 %v2127_v0, %v598_v14  ;;  %s1499_s17 = sld [smem:[#allocation5 + $0x282]]  ;;  %s2650_s27 = sld [smem:[#allocation8 + $0x3]] }
  0xc0   : > { %v618_v28 = vmul.f32 %v2127_v0, %v617_v24  ;;  %v2302_v29 = vmul.f32 %v2136_v4, %v617_v24  ;;  %v609_v30 = vrot.slane %v605_v21, 1  ;;  %v406_v32 = vstv %s2235_s18  ;;  %s2544_s18 = sld [smem:[#allocation9]] }
  0xc1   : > { %v412_v33 = vstv %s2237_s23  ;;  %v426_v37 = vstv %s2245_s20  ;;  %v2340_v50 = vmul.f32 %v2209_v45, %v1024_v11  ;;  %v2343_v51 = vmul.f32 %v502_v19, %v2130_v1  ;;  %s1519_s23 = sld [smem:[#allocation5 + $0x103]] }
  0xc2   : > { %v622_v34 = vrot.slane %v618_v28, 2  ;;  %v623_v35 = vrot.slane %v2302_v29, 2  ;;  %v2313_v36 = vmul.f32 %v412_v33, %v2133_v2  ;;  %v2323_v39 = vmul.f32 %v426_v37, %v2133_v2  ;;  %s1520_s20 = sld [smem:[#allocation5 + $0x283]] }
  0xc3   : > { %481 = vrot.lane.b32.xlu1 %v477_v31, %s1881_s10  ;;  %479 = vrot.lane.b32.xlu0 %v478_v41, %s1881_s10  ;;  %v610_v31 = vrot.slane %v2290_v23, 1  ;;  %v407_v41 = vmul.f32 %v406_v32, %v2130_v1  ;;  %v427_v48 = vmul.f32 %v426_v37, %v2130_v1  ;;  %v788_v59 = vstv %s2278_s30  ;;  %s2546_s30 = sld [smem:[#allocation9 + $0x1]] }
  0xc4   : > { %v624_v44 = vsel %vm431_vm1, %v622_v34, %v623_v35  ;;  %v419_v47 = vrot.slane %v2313_v36, 1  ;;  %v504_v63 = vmul.f32 %v502_v19, %v2133_v2  ;;  %v1030_v13 = vrot.slane %v2340_v50, 1 }
  0xc5   : > { %v611_v38 = vsel %vm417_vm0, %v609_v30, %v610_v31  ;;  %v432_v57 = vrot.slane %v427_v48, 2  ;;  %v692_v15 = vstv %s2304_s13  ;;  %v978_v28 = vstv %s2316_s19  ;;  %s2548_s13 = sld [smem:[#allocation9 + $0x2]]  ;;  %s2571_s19 = sld [smem:[#allocation9 + $0x80]] }
  0xc6   : > { %v614_v43 = vadd.f32 %v611_v38, %v599_v27  ;;  %v984_v30 = vstv %s2329_s14  ;;  %v1029_v37 = vrot.slane %v2295_v25, 1  ;;  %v979_v25 = vmul.f32 %v2217_v49, %v978_v28  ;;  %s2557_s14 = sld [smem:[#allocation9 + $0x4]] }
  0xc7   : > { %671 = vrot.lane.b32.xlu1 %v667_v42, %s1881_s10  ;;  %669 = vrot.lane.b32.xlu0 %v668_v56, %s1881_s10  ;;  %v413_v42 = vmul.f32 %v412_v33, %v2130_v1  ;;  %v856_v1 = vrot.slane %v2272_v17, 2  ;;  %v807_v17 = vstv %s2309_s9  ;;  %v997_v33 = vstv %s2331_s12  ;;  %s2550_s9 = sld [smem:[#allocation9 + $0x3]]  ;;  %s2559_s12 = sld [smem:[#allocation9 + $0x5]] }
  0xc8   : > { %v2346_v56 = vadd.f32 %v624_v44, %v614_v43  ;;  %v808_v24 = vmul.f32 %v2168_v26, %v807_v17  ;;  %v2379_v27 = vmul.f32 %v2163_v22, %v807_v17  ;;  %v985_v43 = vmul.f32 %v2217_v49, %v984_v30 }
  0xc9   : > { %v418_v54 = vrot.slane %v413_v42, 1  ;;  %v2394_v44 = vmul.f32 %v2209_v45, %v984_v30  ;;  %v2400_v48 = vmul.f32 %v2209_v45, %v997_v33  ;;  %v507_v50 = vrot.slane %v2343_v51, 1 }
  0xca   : > { %v812_v38 = vrot.slane %v808_v24, 2  ;;  %v1031_v51 = vsel %vm417_vm0, %v1029_v37, %v1030_v13  ;;  %v408_v7 = vmul.f32 %v406_v32, %v2133_v2  ;;  %v790_v32 = vmul.f32 %v2163_v22, %v788_v59 }
  0xcb   : > { %844 = vrot.lane.b32.xlu1 %v840_v53, %s1881_s10  ;;  %842 = vrot.lane.b32.xlu0 %v841_v8, %s1881_s10  ;;  %v433_v53 = vrot.slane %v2323_v39, 2  ;;  %v420_v3 = vsel %vm417_vm0, %v418_v54, %v419_v47 }
  0xcc   : > { %v423_v6 = vadd.f32 %v420_v3, %v407_v41 }
  0xcf   : > { %1017 = vrot.lane.b32.xlu1 %v1012_v60, %s1881_s10  ;;  %1015 = vrot.lane.b32.xlu0 %v1011_v61, %s1881_s10  ;;  %v794_v60 = vstv %s2280_s24  ;;  %v857_v61 = vrot.slane %v2275_v18, 2  ;;  %v789_v18 = vmul.f32 %v2168_v26, %v788_v59  ;;  %s1521_s24 = sld [smem:[#allocation5 + $0x403]] }
  0xd0   : > { %v795_v8 = vmul.f32 %v2168_v26, %v794_v60  ;;  %v2364_v11 = vmul.f32 %v2163_v22, %v794_v60  ;;  %v990_v60 = vrot.slane %v2394_v44, 1 }
  0xd1   : > { %v858_v34 = vsel %vm431_vm1, %v856_v1, %v857_v61  ;;  %v693_v1 = vmul.f32 %v2127_v0, %v692_v15 }
  0xd2   : > { %v799_v19 = vrot.slane %v795_v8, 1  ;;  %v800_v21 = vrot.slane %v2364_v11, 1  ;;  %v694_v8 = vmul.f32 %v2136_v4, %v692_v15  ;;  %v1041_v15 = vstv %s2396_s22  ;;  %s2563_s22 = sld [smem:[#allocation9 + $0x7]] }
  0xd3   : > { %495 = vrot.lane.b32.xlu1 %v2242_v62, %s1882_s15  ;;  %493 = vrot.lane.b32.xlu0 %v489_v9, %s1882_s15  ;;  %v434_v62 = vsel %vm431_vm1, %v432_v57, %v433_v53  ;;  %v989_v57 = vrot.slane %v985_v43, 1  ;;  %v697_v30 = vrot.slane %v693_v1, 1  ;;  %v1042_v37 = vmul.f32 %v2217_v49, %v1041_v15 }
  0xd4   : > { %v2372_v9 = vadd.f32 %v434_v62, %v423_v6  ;;  %v801_v41 = vsel %vm417_vm0, %v799_v19, %v800_v21  ;;  %v508_v62 = vrot.slane %v504_v63, 1  ;;  %v698_v63 = vrot.slane %v694_v8, 1 }
  0xd5   : > { %v804_v42 = vadd.f32 %v801_v41, %v789_v18  ;;  %v991_v17 = vsel %vm417_vm0, %v989_v57, %v990_v60  ;;  %v1046_v43 = vrot.slane %v1042_v37, 2  ;;  %v805_v39 = vadd.f32 %v800_v21, %v790_v32 }
  0xd6   : > { %v994_v18 = vadd.f32 %v991_v17, %v979_v25  ;;  %v509_v24 = vsel %vm417_vm0, %v507_v50, %v508_v62  ;;  %v882_v25 = vstv %s1499_s17  ;;  %s2567_s17 = sld [smem:[#allocation8 + $0x1]] }
  0xd7   : > { %685 = vrot.lane.b32.xlu1 %v2262_v10, %s1882_s15  ;;  %683 = vrot.lane.b32.xlu0 %v2269_v16, %s1882_s15  ;;  %v813_v10 = vrot.slane %v2379_v27, 2  ;;  %v998_v16 = vmul.f32 %v2217_v49, %v997_v33  ;;  %v868_v33 = vstv %s1498_s11  ;;  %v883_v50 = vmul.f32 %v2168_v26, %v882_v25  ;;  %s2565_s11 = sld [smem:[#allocation6 + $0x1]] }
  0xd8   : > { %v869_v41 = vmul.f32 %v2168_v26, %v868_v33  ;;  %v1058_v26 = vstv %s1519_s23  ;;  %s2573_s23 = sld [smem:[#allocation9 + $0x81]] }
  0xd9   : > { %v814_v54 = vsel %vm431_vm1, %v812_v38, %v813_v10  ;;  %v1002_v6 = vrot.slane %v998_v16, 2  ;;  %v870_v38 = vmul.f32 %v2163_v22, %v868_v33  ;;  %v887_v1 = vrot.slane %v883_v50, 1 }
  0xda   : > { %v2413_v3 = vadd.f32 %v814_v54, %v804_v42  ;;  %v884_v54 = vmul.f32 %v2163_v22, %v882_v25  ;;  %v1060_v40 = vmul.f32 %v2209_v45, %v1058_v26  ;;  %v818_v22 = vadd.f32 %v813_v10, %v805_v39 }
  0xdb   : > { %861 = vrot.lane.b32.xlu1 %v857_v61, %s1881_s10  ;;  %859 = vrot.lane.b32.xlu0 %v858_v34, %s1881_s10  ;;  %v1003_v61 = vrot.slane %v2400_v48, 2  ;;  %v699_v34 = vsel %vm417_vm0, %v697_v30, %v698_v63  ;;  %v772_v39 = vstv %s2587_s2  ;;  %s2831_s2 = sld [smem:[#allocation12 + $0x4]] }
  0xdc   : > { %v888_v57 = vrot.slane %v884_v54, 1 }
  0xdd   : > { %v1004_v0 = vsel %vm431_vm1, %v1002_v6, %v1003_v61 }
  0xde   : > { %v2426_v19 = vadd.f32 %v1004_v0, %v994_v18  ;;  %v889_v6 = vsel %vm417_vm0, %v887_v1, %v888_v57 }
  0xdf   : > { %1034 = vrot.lane.b32.xlu1 %v1030_v13, %s1881_s10  ;;  %1032 = vrot.lane.b32.xlu0 %v1031_v51, %s1881_s10  ;;  %v1043_v13 = vmul.f32 %v2209_v45, %v1041_v15  ;;  %v1072_v51 = vstv %s1520_s20  ;;  %s2579_s20 = sld [smem:[#allocation9 + $0x82]] }
  0xe0   : > { %v1074_v52 = vmul.f32 %v2209_v45, %v1072_v51 }
  0xe1   : > { %v1047_v42 = vrot.slane %v1043_v13, 2 }
  0xe3   : > { %512 = vrot.lane.b32.xlu1 %v508_v62, %s1882_s15  ;;  %510 = vrot.lane.b32.xlu0 %v509_v24, %s1882_s15  ;;  %v1048_v16 = vsel %vm431_vm1, %v1046_v43, %v1047_v42 }
  0xe5   : > { %3170 = sst [smem:[#allocation26_spill]] %s2579_s20 }
  0xe7   : > { %702 = vrot.lane.b32.xlu1 %v698_v63, %s1882_s15  ;;  %700 = vrot.lane.b32.xlu0 %v699_v34, %s1882_s15 }
  0xeb   : > { %875 = vrot.lane.b32.xlu1 %v870_v38, %s1882_s15  ;;  %873 = vrot.lane.b32.xlu0 %v869_v41, %s1882_s15 }
  0xef   : > { %1051 = vrot.lane.b32.xlu1 %v1047_v42, %s1881_s10  ;;  %1049 = vrot.lane.b32.xlu0 %v1048_v16, %s1881_s10  ;;  %s2540_s10 = sld [smem:[#allocation6]] }
  0xf3   : > { %529 = vrot.lane.b32.xlu1 %v525_v46, %s1882_s15  ;;  %527 = vrot.lane.b32.xlu0 %v2230_v55, %s1882_s15  ;;  %v1059_v46 = vmul.f32 %v2217_v49, %v1058_v26  ;;  %v1073_v55 = vmul.f32 %v2217_v49, %v1072_v51 }
  0xf5   : > { %v1077_v62 = vrot.slane %v1073_v55, 1  ;;  %v980_v55 = vmul.f32 %v2209_v45, %v978_v28 }
  0xf7   : > { %719 = vrot.lane.b32.xlu1 %v715_v58, %s1882_s15  ;;  %717 = vrot.lane.b32.xlu0 %v2252_v5, %s1882_s15  ;;  %v1089_v58 = vstv %s1521_s24  ;;  %v1078_v5 = vrot.slane %v1074_v52, 1  ;;  %s2581_s24 = sld [smem:[#allocation9 + $0x83]] }
  0xf8   : > { %v1090_v8 = vmul.f32 %v2217_v49, %v1089_v58  ;;  %v1091_v17 = vmul.f32 %v2209_v45, %v1089_v58  ;;  %v995_v45 = vadd.f32 %v990_v60, %v980_v55 }
  0xf9   : > { %v1079_v18 = vsel %vm417_vm0, %v1077_v62, %v1078_v5  ;;  %v536_v62 = vstv %s2540_s10  ;;  %s2621_s10 = sld [smem:[#allocation9 + $0x104]] }
  0xfa   : > { %v1095_v0 = vrot.slane %v1091_v17, 2  ;;  %v1094_v24 = vrot.slane %v1090_v8, 2  ;;  %v2599_v60 = vadd.f32 %v1003_v61, %v995_v45  ;;  %v540_v8 = vstv %s2542_s16  ;;  %s2891_s16 = sld [smem:[#allocation12 + $0x7]] }
  0xfb   : > { %892 = vrot.lane.b32.xlu1 %v888_v57, %s1882_s15  ;;  %890 = vrot.lane.b32.xlu0 %v889_v6, %s1882_s15  ;;  %v546_v17 = vstv %s2544_s18  ;;  %v570_v61 = vstv %s2557_s14  ;;  %s2759_s14 = sld [smem:[#allocation9 + $0x185]]  ;;  %s3176_s18 = sld [smem:[#allocation21_spill]] }
  0xfc   : > { %v1096_v49 = vsel %vm431_vm1, %v1094_v24, %v1095_v0  ;;  %v564_v24 = vstv %s2550_s9  ;;  %s2749_s9 = sld [smem:[#allocation9 + $0x184]] }
  0xff   : > { %1065 = vrot.lane.b32.xlu1 %v1060_v40, %s1882_s15  ;;  %1063 = vrot.lane.b32.xlu0 %v1059_v46, %s1882_s15 }
 0x101   : > { %p392_p4 = scmp.lt.s32.totalorder %s3176_s18, 1 }
 0x103   : > { %909 = vrot.lane.b32.xlu1 %v905_v12, %s1882_s15  ;;  %907 = vrot.lane.b32.xlu0 %v2286_v20, %s1882_s15  ;;  %v424_v12 = vadd.f32 %v419_v47, %v408_v7  ;;  %v600_v20 = vmul.f32 %v2136_v4, %v598_v14  ;;  %s3189_s18 = smov (!%p392_p4, %s3176_s18), 1 }
 0x105   : > { %v438_v34 = vadd.f32 %v433_v53, %v424_v12  ;;  %v615_v37 = vadd.f32 %v610_v31, %v600_v20 }
 0x107   : > { %1082 = vrot.lane.b32.xlu1 %v1078_v5, %s1882_s15  ;;  %1080 = vrot.lane.b32.xlu0 %v1079_v18, %s1882_s15  ;;  %v628_v4 = vadd.f32 %v623_v35, %v615_v37  ;;  %v552_v18 = vstv %s2546_s30  ;;  %v736_v37 = vstv %s2571_s19  ;;  %s2737_s30 = sld [smem:[#allocation9 + $0x182]] }
 0x108   : > { %s2807_s19 = sld [smem:[#allocation12 + $0x2]] }
 0x10b   : > { %1099 = vrot.lane.b32.xlu1 %v1095_v0, %s1882_s15  ;;  %1097 = vrot.lane.b32.xlu0 %v1096_v49, %s1882_s15  ;;  %s2561_s15 = sld [smem:[#allocation9 + $0x6]]  ;;  %v558_v0 = vstv %s2548_s13  ;;  %v576_v49 = vstv %s2559_s12  ;;  %s2747_s13 = sld [smem:[#allocation9 + $0x183]] }
 0x10c   : > { %s2761_s12 = sld [smem:[#allocation9 + $0x186]] }
 0x111   : > { %v582_v7 = vstv %s2561_s15  ;;  %s2771_s15 = sld [smem:[#allocation9 + $0x187]] }
 0x121   : > { %v636_v63 = vpop.permute.xlu1 %635  ;;  %v446_v15 = vpop.permute.xlu0 %445 }
 0x122   : > { %v641_v30 = vadd.f32 %v636_v63, %v2346_v56  ;;  %v451_v33 = vadd.f32 %v446_v15, %v2372_v9  ;;  %v588_v63 = vstv %s2563_s22  ;;  %v730_v15 = vstv %s2567_s17  ;;  %s2773_s22 = sld [smem:[#allocation11]]  ;;  %s2785_s17 = sld [smem:[#allocation11 + $0x1]] }
 0x125   : > { %v465_v13 = vpop.permute.xlu1 %464  ;;  %v448_v2 = vpop.permute.xlu0 %447 }
 0x126   : > { %v452_v36 = vadd.f32 %v448_v2, %v438_v34  ;;  %v748_v2 = vstv %s2579_s20  ;;  %s2652_s20 = sld [smem:[#allocation9 + $0x180]] }
 0x128   : > { %v2497_v47 = vadd.f32 %v465_v13, %v452_v36  ;;  %v742_v13 = vstv %s2573_s23  ;;  %v754_v36 = vstv %s2581_s24  ;;  %s2809_s23 = sld [smem:[#allocation11 + $0x3]]  ;;  %s2879_s24 = sld [smem:[#allocation12 + $0x6]] }
 0x129   : > { %v655_v14 = vpop.permute.xlu1 %654  ;;  %v638_v56 = vpop.permute.xlu0 %637 }
 0x12a   : > { %v642_v53 = vadd.f32 %v638_v56, %v628_v4  ;;  %v760_v4 = vstv %s2583_s0  ;;  %s2819_s0 = sld [smem:[#allocation12 + $0x3]] }
 0x12c   : > { %v2501_v23 = vadd.f32 %v655_v14, %v642_v53  ;;  %v766_v14 = vstv %s2585_s1  ;;  %v778_v53 = vstv %s2589_s3  ;;  %3172 = sst [smem:[#allocation28_spill]] %s2652_s20  ;;  %s2821_s1 = sld [smem:[#allocation11 + $0x4]] }
 0x12d   : > { %v463_v9 = vpop.permute.xlu1 %462  ;;  %v653_v38 = vpop.permute.xlu0 %652  ;;  %s2662_s3 = sld [smem:[#allocation9 + $0x181]] }
 0x12e   : > { %v2503_v31 = vadd.f32 %v463_v9, %v451_v33  ;;  %v2507_v59 = vadd.f32 %v653_v38, %v641_v30  ;;  %v726_v30 = vstv %s2565_s11  ;;  %s2783_s11 = sld [smem:[#allocation12]] }
 0x131   : > { %v828_v29 = vpop.permute.xlu1 %827  ;;  %v826_v41 = vpop.permute.xlu0 %825 }
 0x132   : > { %v2509_v35 = vadd.f32 %v828_v29, %v818_v22  ;;  %v2512_v42 = vadd.f32 %v826_v41, %v2413_v3  ;;  %v916_v22 = vstv %s2593_s4  ;;  %v920_v29 = vstv %s2595_s5  ;;  %s2861_s4 = sld [smem:[#allocation11 + $0x5]] }
 0x133   : > { %3173 = sst [smem:[#allocation29_spill]] %s2662_s3  ;;  %s2863_s5 = sld [smem:[#allocation12 + $0x5]] }
 0x135   : > { %v482_v11 = vpop.permute.xlu1 %481  ;;  %v480_v21 = vpop.permute.xlu0 %479 }
 0x136   : > { %v486_v48 = vadd.f32 %v482_v11, %v2497_v47  ;;  %v485_v12 = vadd.f32 %v480_v21, %v2503_v31  ;;  %v926_v21 = vstv %s2605_s6 }
 0x139   : > { %v2514_v43 = vpop.permute.xlu1 %671  ;;  %v2516_v16 = vpop.permute.xlu0 %669 }
 0x13a   : > { %v676_v47 = vadd.f32 %v2514_v43, %v2501_v23  ;;  %v675_v9 = vadd.f32 %v2516_v16, %v2507_v59  ;;  %v932_v43 = vstv %s2607_s21  ;;  %s3179_s21 = sld [smem:[#allocation37_spill]] }
 0x13d   : > { %v2518_v25 = vpop.permute.xlu1 %844  ;;  %v2520_v50 = vpop.permute.xlu0 %842 }
 0x141   : > { %v2522_v27 = vpop.permute.xlu1 %1017  ;;  %v2524_v10 = vpop.permute.xlu0 %1015 }
 0x145   : > { %v496_v54 = vpop.permute.xlu1 %495  ;;  %v2526_v57 = vpop.permute.xlu0 %493 }
 0x146   : > { %v500_v33 = vadd.f32 %v496_v54, %v486_v48  ;;  %v499_v32 = vadd.f32 %v2526_v57, %v485_v12  ;;  %v938_v54 = vstv %s2613_s28  ;;  %v944_v57 = vstv %s2615_s8 }
 0x149   : > { %v2528_v3 = vpop.permute.xlu1 %685  ;;  %v2530_v1 = vpop.permute.xlu0 %683 }
 0x14a   : > { %v690_v23 = vadd.f32 %v2528_v3, %v676_v47  ;;  %v689_v59 = vadd.f32 %v2530_v1, %v675_v9  ;;  %v956_v3 = vstv %s2623_s26  ;;  %v849_v1 = vadd.f32 %v2518_v25, %v2509_v35  ;;  %s1563_s26 = sshll.u32 %s3189_s18, 7 }
 0x14b   : > { %v848_v47 = vadd.f32 %v2520_v50, %v2512_v42  ;;  %v1106_v25 = vstv %s2644_s7  ;;  %v1116_v42 = vstv %s2652_s20  ;;  %s2797_s20 = sld [smem:[#allocation11 + $0x2]]  ;;  %s2877_s7 = sld [smem:[#allocation11 + $0x6]] }
 0x14c   : > { %s2997_s8 = scalar_lea.vmem %s3179_s21, %s1563_s26 }
 0x14d   : > { %v2532_v26 = vpop.permute.xlu1 %861  ;;  %v2534_v6 = vpop.permute.xlu0 %859 }
 0x14e   : > { %v866_v50 = vadd.f32 %v2532_v26, %v849_v1 }
 0x151   : > { %v2536_v51 = vpop.permute.xlu1 %1034  ;;  %v2538_v40 = vpop.permute.xlu0 %1032 }
 0x155   : > { %v513_v46 = vpop.permute.xlu1 %512  ;;  %v2555_v52 = vpop.permute.xlu0 %510 }
 0x156   : > { %v517_v56 = vadd.f32 %v513_v46, %v500_v33  ;;  %v516_v31 = vadd.f32 %v2555_v52, %v499_v32  ;;  %v950_v52 = vstv %s2621_s10  ;;  %v962_v33 = vstv %s2631_s25 }
 0x157   : > { %v968_v32 = vstv %s2633_s29 }
 0x159   : > { %v2569_v58 = vpop.permute.xlu1 %702  ;;  %v2577_v28 = vpop.permute.xlu0 %700 }
 0x15a   : > { %v707_v46 = vadd.f32 %v2569_v58, %v690_v23  ;;  %v706_v45 = vadd.f32 %v2577_v28, %v689_v59  ;;  %v1022_v28 = vadd.f32 %v2522_v27, %v2599_v60  ;;  %v1110_v23 = vstv %s2650_s27  ;;  %s2889_s27 = sld [smem:[#allocation11 + $0x7]] }
 0x15b   : > { %v1122_v59 = vstv %s2662_s3  ;;  %s2795_s3 = sld [smem:[#allocation12 + $0x1]] }
 0x15c   : > { %v1039_v27 = vadd.f32 %v2536_v51, %v1022_v28 }
 0x15d   : > { %v2591_v44 = vpop.permute.xlu1 %875  ;;  %v2601_v5 = vpop.permute.xlu0 %873 }
 0x161   : > { %v2626_v20 = vpop.permute.xlu1 %1051  ;;  %v2635_v34 = vpop.permute.xlu0 %1049 }
 0x165   : > { %v530_v38 = vpop.permute.xlu1 %529  ;;  %v528_v11 = vpop.permute.xlu0 %527 }
 0x166   : > { %v534_v41 = vadd.f32 %v530_v38, %v517_v56  ;;  %v533_v16 = vadd.f32 %v528_v11, %v516_v31 }
 0x168   : > { %v538_v55 = vmul.f32 %v536_v62, %v534_v41  ;;  %v537_v48 = vmul.f32 %v536_v62, %v533_v16  ;;  %v1021_v62 = vadd.f32 %v2524_v10, %v2426_v19  ;;  %v865_v41 = vadd.f32 %v2534_v6, %v848_v47 }
 0x169   : > { %v720_v12 = vpop.permute.xlu1 %719  ;;  %v718_v9 = vpop.permute.xlu0 %717  ;;  %v880_v6 = vadd.f32 %v2591_v44, %v866_v50 }
 0x16a   : > { %v542_v58 = vadd.f32 %v540_v8, %v538_v55  ;;  %v724_v56 = vadd.f32 %v720_v12, %v707_v46  ;;  %v541_v31 = vadd.f32 %v540_v8, %v537_v48  ;;  %v723_v38 = vadd.f32 %v718_v9, %v706_v45 }
 0x16b   : > { %v1038_v19 = vadd.f32 %v2538_v40, %v1021_v62  ;;  %v879_v51 = vadd.f32 %v2601_v5, %v865_v41  ;;  %v1056_v40 = vadd.f32 %v2626_v20, %v1039_v27 }
 0x16c   : > { %v544_v35 = vmax.f32 %v542_v58, 0.0  ;;  %v543_v60 = vmax.f32 %v541_v31, 0.0  ;;  %v728_v8 = vmul.f32 %v726_v30, %v724_v56  ;;  %v727_v11 = vmul.f32 %v726_v30, %v723_v38 }
 0x16d   : > { %v893_v10 = vpop.permute.xlu1 %892  ;;  %v891_v26 = vpop.permute.xlu0 %890  ;;  %v1055_v16 = vadd.f32 %v2635_v34, %v1038_v19 }
 0x16e   : > { %v548_v46 = vmul.f32 %v546_v17, %v544_v35  ;;  %v554_v30 = vmul.f32 %v552_v18, %v544_v35  ;;  %v560_v55 = vmul.f32 %v558_v0, %v544_v35  ;;  %v566_v44 = vmul.f32 %v564_v24, %v544_v35 }
 0x16f   : > { %v572_v5 = vmul.f32 %v570_v61, %v544_v35  ;;  %v578_v20 = vmul.f32 %v576_v49, %v544_v35  ;;  %v584_v45 = vmul.f32 %v582_v7, %v544_v35  ;;  %v590_v34 = vmul.f32 %v588_v63, %v544_v35 }
 0x170   : > { %v547_v12 = vmul.f32 %v546_v17, %v543_v60  ;;  %v553_v1 = vmul.f32 %v552_v18, %v543_v60  ;;  %v732_v47 = vadd.f32 %v730_v15, %v728_v8  ;;  %v731_v58 = vadd.f32 %v730_v15, %v727_v11 }
 0x171   : > { %v1066_v48 = vpop.permute.xlu1 %1065  ;;  %v1064_v56 = vpop.permute.xlu0 %1063  ;;  %v559_v9 = vmul.f32 %v558_v0, %v543_v60  ;;  %v565_v28 = vmul.f32 %v564_v24, %v543_v60  ;;  %v571_v62 = vmul.f32 %v570_v61, %v543_v60  ;;  %v577_v31 = vmul.f32 %v576_v49, %v543_v60 }
 0x172   : > { %v583_v17 = vmul.f32 %v582_v7, %v543_v60  ;;  %v589_v18 = vmul.f32 %v588_v63, %v543_v60  ;;  %v734_v38 = vmax.f32 %v732_v47, 0.0  ;;  %v897_v15 = vadd.f32 %v893_v10, %v880_v6 }
 0x173   : > { %v733_v35 = vmax.f32 %v731_v58, 0.0  ;;  %v896_v0 = vadd.f32 %v891_v26, %v879_v51  ;;  %v1070_v50 = vadd.f32 %v1066_v48, %v1056_v40  ;;  %v1069_v41 = vadd.f32 %v1064_v56, %v1055_v16 }
 0x174   : > { %v738_v61 = vmul.f32 %v736_v37, %v734_v38  ;;  %v744_v49 = vmul.f32 %v742_v13, %v734_v38  ;;  %v750_v7 = vmul.f32 %v748_v2, %v734_v38  ;;  %v756_v63 = vmul.f32 %v754_v36, %v734_v38 }
 0x175   : > { %v910_v24 = vpop.permute.xlu1 %909  ;;  %v908_v27 = vpop.permute.xlu0 %907  ;;  %v762_v19 = vmul.f32 %v760_v4, %v734_v38  ;;  %v768_v10 = vmul.f32 %v766_v14, %v734_v38  ;;  %v774_v60 = vmul.f32 %v772_v39, %v734_v38  ;;  %v780_v8 = vmul.f32 %v778_v53, %v734_v38 }
 0x176   : > { %v2763_v11 = vadd.f32 %v738_v61, %v548_v46  ;;  %v2765_v26 = vadd.f32 %v744_v49, %v554_v30  ;;  %v2767_v6 = vadd.f32 %v750_v7, %v560_v55  ;;  %v2769_v51 = vadd.f32 %v756_v63, %v566_v44 }
 0x177   : > { %v2775_v40 = vadd.f32 %v762_v19, %v572_v5  ;;  %v2777_v16 = vadd.f32 %v768_v10, %v578_v20  ;;  %v2779_v46 = vadd.f32 %v774_v60, %v584_v45  ;;  %v2781_v30 = vadd.f32 %v780_v8, %v590_v34 }
 0x178   : > { %v737_v44 = vmul.f32 %v736_v37, %v733_v35  ;;  %v743_v48 = vmul.f32 %v742_v13, %v733_v35  ;;  %v749_v5 = vmul.f32 %v748_v2, %v733_v35  ;;  %v755_v47 = vmul.f32 %v754_v36, %v733_v35 }
 0x179   : > { %v1083_v55 = vpop.permute.xlu1 %1082  ;;  %v1081_v20 = vpop.permute.xlu0 %1080  ;;  %v761_v45 = vmul.f32 %v760_v4, %v733_v35  ;;  %v767_v34 = vmul.f32 %v766_v14, %v733_v35  ;;  %v773_v58 = vmul.f32 %v772_v39, %v733_v35  ;;  %v779_v56 = vmul.f32 %v778_v53, %v733_v35 }
 0x17a   : > { %v2811_v37 = vadd.f32 %v737_v44, %v547_v12  ;;  %v2813_v13 = vadd.f32 %v743_v48, %v553_v1  ;;  %v2815_v2 = vadd.f32 %v749_v5, %v559_v9  ;;  %v2817_v36 = vadd.f32 %v755_v47, %v565_v28 }
 0x17b   : > { %v2823_v4 = vadd.f32 %v761_v45, %v571_v62  ;;  %v2825_v14 = vadd.f32 %v767_v34, %v577_v31  ;;  %v2827_v39 = vadd.f32 %v773_v58, %v583_v17  ;;  %v2829_v53 = vadd.f32 %v779_v56, %v589_v18 }
 0x17c   : > { %v914_v1 = vadd.f32 %v910_v24, %v897_v15  ;;  %v913_v9 = vadd.f32 %v908_v27, %v896_v0  ;;  %v1087_v28 = vadd.f32 %v1083_v55, %v1070_v50  ;;  %v1086_v62 = vadd.f32 %v1081_v20, %v1069_v41 }
 0x17d   : > { %v1100_v12 = vpop.permute.xlu1 %1099  ;;  %v1098_v31 = vpop.permute.xlu0 %1097  ;;  %v1128_v17 = vstv %s2737_s30  ;;  %v1134_v18 = vstv %s2747_s13  ;;  %v1140_v38 = vstv %s2749_s9  ;;  %v1146_v35 = vstv %s2759_s14 }
 0x17e   : > { %v918_v61 = vmul.f32 %v916_v22, %v914_v1  ;;  %v917_v15 = vmul.f32 %v916_v22, %v913_v9  ;;  %v1104_v0 = vadd.f32 %v1100_v12, %v1087_v28  ;;  %v1103_v50 = vadd.f32 %v1098_v31, %v1086_v62 }
 0x17f   : > { %v1152_v41 = vstv %s2761_s12  ;;  %v1158_v24 = vstv %s2771_s15  ;;  %v1164_v49 = vstv %s2773_s22  ;;  %v1168_v7 = vstv %s2783_s11 }
 0x180   : > { %v922_v63 = vadd.f32 %v920_v29, %v918_v61  ;;  %v921_v27 = vadd.f32 %v920_v29, %v917_v15  ;;  %v1108_v19 = vmul.f32 %v1106_v25, %v1104_v0  ;;  %v1107_v22 = vmul.f32 %v1106_v25, %v1103_v50 }
 0x181   : > { %v1178_v10 = vstv %s2785_s17  ;;  %v1182_v60 = vstv %s2795_s3  ;;  %v1191_v8 = vstv %s2797_s20  ;;  %v1195_v55 = vstv %s2807_s19 }
 0x182   : > { %v924_v44 = vmax.f32 %v922_v63, 0.0  ;;  %v1204_v48 = vstv %s2809_s23  ;;  %v1208_v5 = vstv %s2819_s0  ;;  %v1217_v29 = vstv %s2821_s1 }
 0x183   : > { %v923_v47 = vmax.f32 %v921_v27, 0.0  ;;  %v1221_v20 = vstv %s2831_s2  ;;  %v1112_v25 = vadd.f32 %v1110_v23, %v1108_v19  ;;  %v1111_v45 = vadd.f32 %v1110_v23, %v1107_v22 }
 0x184   : > { %v928_v34 = vmul.f32 %v926_v21, %v924_v44  ;;  %v934_v58 = vmul.f32 %v932_v43, %v924_v44  ;;  %v940_v56 = vmul.f32 %v938_v54, %v924_v44  ;;  %v946_v12 = vmul.f32 %v944_v57, %v924_v44 }
 0x185   : > { %v952_v1 = vmul.f32 %v950_v52, %v924_v44  ;;  %v958_v9 = vmul.f32 %v956_v3, %v924_v44  ;;  %v964_v23 = vmul.f32 %v962_v33, %v924_v44  ;;  %v970_v28 = vmul.f32 %v968_v32, %v924_v44 }
 0x186   : > { %v930_v62 = vadd.f32 %v928_v34, %v2763_v11  ;;  %v936_v31 = vadd.f32 %v934_v58, %v2765_v26  ;;  %v942_v61 = vadd.f32 %v940_v56, %v2767_v6  ;;  %v948_v15 = vadd.f32 %v946_v12, %v2769_v51 }
 0x187   : > { %v954_v0 = vadd.f32 %v952_v1, %v2775_v40  ;;  %v960_v50 = vadd.f32 %v958_v9, %v2777_v16  ;;  %v966_v63 = vadd.f32 %v964_v23, %v2779_v46  ;;  %v972_v27 = vadd.f32 %v970_v28, %v2781_v30 }
 0x188   : > { %v927_v19 = vmul.f32 %v926_v21, %v923_v47  ;;  %v933_v22 = vmul.f32 %v932_v43, %v923_v47  ;;  %v939_v11 = vmul.f32 %v938_v54, %v923_v47  ;;  %v945_v26 = vmul.f32 %v944_v57, %v923_v47 }
 0x189   : > { %v951_v6 = vmul.f32 %v950_v52, %v923_v47  ;;  %v957_v51 = vmul.f32 %v956_v3, %v923_v47  ;;  %v963_v40 = vmul.f32 %v962_v33, %v923_v47  ;;  %v969_v16 = vmul.f32 %v968_v32, %v923_v47 }
 0x18a   : > { %v2918_v21 = vadd.f32 %v927_v19, %v2811_v37  ;;  %v2921_v43 = vadd.f32 %v933_v22, %v2813_v13  ;;  %v2924_v54 = vadd.f32 %v939_v11, %v2815_v2  ;;  %v2927_v57 = vadd.f32 %v945_v26, %v2817_v36 }
 0x18b   : > { %v2931_v52 = vadd.f32 %v951_v6, %v2823_v4  ;;  %v2934_v3 = vadd.f32 %v957_v51, %v2825_v14  ;;  %v2937_v33 = vadd.f32 %v963_v40, %v2827_v39  ;;  %v2940_v32 = vadd.f32 %v969_v16, %v2829_v53 }
 0x18c   : > { %v1230_v46 = vstv %s2861_s4  ;;  %v1234_v30 = vstv %s2863_s5  ;;  %v1243_v37 = vstv %s2877_s7  ;;  %v1114_v13 = vmax.f32 %v1112_v25, 0.0 }
 0x18d   : > { %v1247_v2 = vstv %s2879_s24  ;;  %v1256_v36 = vstv %s2889_s27  ;;  %v1260_v4 = vstv %s2891_s16  ;;  %v1113_v14 = vmax.f32 %v1111_v45, 0.0 }
 0x18e   : > { %v1118_v39 = vmul.f32 %v1116_v42, %v1114_v13  ;;  %v1124_v53 = vmul.f32 %v1122_v59, %v1114_v13  ;;  %v1130_v44 = vmul.f32 %v1128_v17, %v1114_v13  ;;  %v1136_v47 = vmul.f32 %v1134_v18, %v1114_v13 }
 0x18f   : > { %v1142_v25 = vmul.f32 %v1140_v38, %v1114_v13  ;;  %v1148_v45 = vmul.f32 %v1146_v35, %v1114_v13  ;;  %v1154_v34 = vmul.f32 %v1152_v41, %v1114_v13  ;;  %v1160_v58 = vmul.f32 %v1158_v24, %v1114_v13 }
 0x190   : > { %v1120_v56 = vadd.f32 %v1118_v39, %v930_v62  ;;  %v1126_v12 = vadd.f32 %v1124_v53, %v936_v31  ;;  %v1132_v1 = vadd.f32 %v1130_v44, %v942_v61  ;;  %v1138_v9 = vadd.f32 %v1136_v47, %v948_v15 }
 0x191   : > { %v1144_v23 = vadd.f32 %v1142_v25, %v954_v0  ;;  %v1150_v28 = vadd.f32 %v1148_v45, %v960_v50  ;;  %v1156_v19 = vadd.f32 %v1154_v34, %v966_v63  ;;  %v1162_v22 = vadd.f32 %v1160_v58, %v972_v27 }
 0x192   : > { %v1166_v11 = vmul.f32 %v1164_v49, %v1120_v56  ;;  %v1180_v62 = vmul.f32 %v1178_v10, %v1126_v12  ;;  %v1193_v31 = vmul.f32 %v1191_v8, %v1132_v1  ;;  %v1206_v61 = vmul.f32 %v1204_v48, %v1138_v9 }
 0x193   : > { %v1219_v15 = vmul.f32 %v1217_v29, %v1144_v23  ;;  %v1232_v0 = vmul.f32 %v1230_v46, %v1150_v28  ;;  %v1245_v50 = vmul.f32 %v1243_v37, %v1156_v19  ;;  %v1258_v63 = vmul.f32 %v1256_v36, %v1162_v22 }
 0x194   : > { %v1170_v27 = vadd.f32 %v1168_v7, %v1166_v11  ;;  %v1184_v26 = vadd.f32 %v1182_v60, %v1180_v62  ;;  %v1197_v6 = vadd.f32 %v1195_v55, %v1193_v31  ;;  %v1210_v51 = vadd.f32 %v1208_v5, %v1206_v61 }
 0x195   : > { %v1223_v40 = vadd.f32 %v1221_v20, %v1219_v15  ;;  %v1236_v16 = vadd.f32 %v1234_v30, %v1232_v0  ;;  %v1249_v13 = vadd.f32 %v1247_v2, %v1245_v50  ;;  %v1262_v39 = vadd.f32 %v1260_v4, %v1258_v63 }
 0x196   : > { %v1172_v53 = vmax.f32 %v1170_v27, 0.0  ;;  %v1186_v44 = vmax.f32 %v1184_v26, 0.0  ;;  %v1199_v47 = vmax.f32 %v1197_v6, 0.0  ;;  %v1212_v25 = vmax.f32 %v1210_v51, 0.0 }
 0x197   : > { %v1225_v45 = vmax.f32 %v1223_v40, 0.0  ;;  %v1238_v34 = vmax.f32 %v1236_v16, 0.0  ;;  %v1251_v58 = vmax.f32 %v1249_v13, 0.0  ;;  %v1264_v56 = vmax.f32 %v1262_v39, 0.0 }
 0x198   : > { %1176 = vst.msk [vmem:[%s2997_s8 + $0x8] sm:$0x3f] %vm1175_vm2, %v1172_v53  ;;  %1535 = vst.msk [vmem:[%s2997_s8 + $0x18] sm:$0x3f] %vm1175_vm2, %v1186_v44  ;;  %v1117_v12 = vmul.f32 %v1116_v42, %v1113_v14  ;;  %v1123_v1 = vmul.f32 %v1122_v59, %v1113_v14  ;;  %v1129_v9 = vmul.f32 %v1128_v17, %v1113_v14 }
 0x199   : > { %1539 = vst.msk [vmem:[%s2997_s8 + $0x28] sm:$0x3f] %vm1175_vm2, %v1199_v47  ;;  %1543 = vst.msk [vmem:[%s2997_s8 + $0x38] sm:$0x3f] %vm1175_vm2, %v1212_v25  ;;  %v1135_v23 = vmul.f32 %v1134_v18, %v1113_v14  ;;  %v1141_v42 = vmul.f32 %v1140_v38, %v1113_v14  ;;  %v1147_v59 = vmul.f32 %v1146_v35, %v1113_v14 }
 0x19a   : > { %1547 = vst.msk [vmem:[%s2997_s8 + $0x48] sm:$0x3f] %vm1175_vm2, %v1225_v45  ;;  %1551 = vst.msk [vmem:[%s2997_s8 + $0x58] sm:$0x3f] %vm1175_vm2, %v1238_v34  ;;  %v1153_v17 = vmul.f32 %v1152_v41, %v1113_v14  ;;  %v1159_v18 = vmul.f32 %v1158_v24, %v1113_v14  ;;  %v1119_v28 = vadd.f32 %v1117_v12, %v2918_v21 }
 0x19b   : > { %1555 = vst.msk [vmem:[%s2997_s8 + $0x68] sm:$0x3f] %vm1175_vm2, %v1251_v58  ;;  %1559 = vst.msk [vmem:[%s2997_s8 + $0x78] sm:$0x3f] %vm1175_vm2, %v1264_v56  ;;  %v1125_v19 = vadd.f32 %v1123_v1, %v2921_v43  ;;  %v1131_v22 = vadd.f32 %v1129_v9, %v2924_v54  ;;  %v1137_v38 = vadd.f32 %v1135_v23, %v2927_v57 }
 0x19c   : > { %v1143_v35 = vadd.f32 %v1141_v42, %v2931_v52  ;;  %v1149_v41 = vadd.f32 %v1147_v59, %v2934_v3  ;;  %v1155_v24 = vadd.f32 %v1153_v17, %v2937_v33  ;;  %v1161_v21 = vadd.f32 %v1159_v18, %v2940_v32 }
 0x19d   : > { %v1165_v43 = vmul.f32 %v1164_v49, %v1119_v28  ;;  %v1179_v54 = vmul.f32 %v1178_v10, %v1125_v19  ;;  %v1192_v14 = vmul.f32 %v1191_v8, %v1131_v22  ;;  %v1205_v57 = vmul.f32 %v1204_v48, %v1137_v38 }
 0x19e   : > { %v1218_v52 = vmul.f32 %v1217_v29, %v1143_v35  ;;  %v1231_v11 = vmul.f32 %v1230_v46, %v1149_v41  ;;  %v1244_v3 = vmul.f32 %v1243_v37, %v1155_v24  ;;  %v1257_v33 = vmul.f32 %v1256_v36, %v1161_v21 }
 0x19f   : > { %v1169_v62 = vadd.f32 %v1168_v7, %v1165_v43  ;;  %v1183_v32 = vadd.f32 %v1182_v60, %v1179_v54  ;;  %v1196_v49 = vadd.f32 %v1195_v55, %v1192_v14  ;;  %v1209_v10 = vadd.f32 %v1208_v5, %v1205_v57 }
 0x1a0   : > { %v1222_v8 = vadd.f32 %v1221_v20, %v1218_v52  ;;  %v1235_v48 = vadd.f32 %v1234_v30, %v1231_v11  ;;  %v1248_v29 = vadd.f32 %v1247_v2, %v1244_v3  ;;  %v1261_v7 = vadd.f32 %v1260_v4, %v1257_v33 }
 0x1a1   : > { %v1171_v60 = vmax.f32 %v1169_v62, 0.0  ;;  %v1185_v46 = vmax.f32 %v1183_v32, 0.0  ;;  %v1198_v37 = vmax.f32 %v1196_v49, 0.0  ;;  %v1211_v55 = vmax.f32 %v1209_v10, 0.0 }
 0x1a2   : > { %v1224_v36 = vmax.f32 %v1222_v8, 0.0  ;;  %v1237_v31 = vmax.f32 %v1235_v48, 0.0  ;;  %v1250_v5 = vmax.f32 %v1248_v29, 0.0  ;;  %v1263_v61 = vmax.f32 %v1261_v7, 0.0 }
 0x1a3   : > { %1174 = vst.msk [vmem:[%s2997_s8] sm:$0xff] %vm1173_vm3, %v1171_v60  ;;  %1534 = vst.msk [vmem:[%s2997_s8 + $0x10] sm:$0xff] %vm1173_vm3, %v1185_v46 }
 0x1a4   : > { %1538 = vst.msk [vmem:[%s2997_s8 + $0x20] sm:$0xff] %vm1173_vm3, %v1198_v37  ;;  %1542 = vst.msk [vmem:[%s2997_s8 + $0x30] sm:$0xff] %vm1173_vm3, %v1211_v55 }
 0x1a5   : > { %1546 = vst.msk [vmem:[%s2997_s8 + $0x40] sm:$0xff] %vm1173_vm3, %v1224_v36  ;;  %1550 = vst.msk [vmem:[%s2997_s8 + $0x50] sm:$0xff] %vm1173_vm3, %v1237_v31 }
 0x1a6   : > { %1554 = vst.msk [vmem:[%s2997_s8 + $0x60] sm:$0xff] %vm1173_vm3, %v1250_v5  ;;  %1558 = vst.msk [vmem:[%s2997_s8 + $0x70] sm:$0xff] %vm1173_vm3, %v1263_v61 }
 0x1a7 PF: > { %s3180_s3 = sld [smem:[#allocation23_spill]]  ;;  %s3181_s24 = sld [smem:[#allocation19_spill]] }
 0x1a8   : > { %s3182_s25 = sld [smem:[#allocation20_spill]]  ;;  %s3183_s26 = sld [smem:[#allocation25_spill]] }
 0x1a9   : > { %s3184_s27 = sld [smem:[#allocation22_spill]]  ;;  %s3185_s28 = sld [smem:[#allocation24_spill]] }
 0x1ad   : > { %s24_s29 = sadd.s32 1, %s3180_s3  }
 0x1ae   : > { %p21_p8 = scmp.ge.s32.totalorder %s24_s29, 4  }
 0x1b0   :  { %23 = sbr.rel (!%p21_p8) target bundleno = 17 (0x11), region = 124 }
 0x1b7   :  { %1298 = vsyncpa [#allocation3], 1 }
 0x1b8   :  { %1300 = vsyncpa [#allocation3 + $0x1], 1 }
 0x1b9   :  { %1301 = vsyncpa [#allocation4], 1 }
 0x1ba   :  { %1303 = vsyncpa [#allocation4 + $0x1], 1 }
 0x1bb   :  { %1304 = vsyncpa [#allocation7], 1 }
 0x1bc   :  { %1305 = vsyncpa [#allocation10], 1 }
 0x1bd   :  { %1306 = vsyncpa [#allocation13], 1 }

</bundles_post_ra>
